<compile_context>
chip_gen: v5e
topology: v5e:2x2
jax: 0.10.0
libtpu: 0.0.40
codegen_flags: <defaults>
</compile_context>

<pallas_src>
import functools

import jax
import jax.numpy as jnp
from jax import lax
from jax.experimental import pallas as pl
from jax.experimental.pallas import tpu as pltpu


def _make_kernel(heads, d, c2, use_residual, compute_dtype, approx_recip):
    """Builds the fused kernel body. All arguments are static."""
    cdt = compute_dtype

    def silu(z):
        # z * sigmoid(z); the reciprocal goes to the EUP (otherwise-idle slot).
        return z * pl.reciprocal(1.0 + jnp.exp(-z), approx=approx_recip)

    def kernel(xf_ref, xt_ref, w1_ref, b1_ref, wq_ref, bq_ref, wv_ref, bv_ref,
               wkq_ref, bkq_ref, pos_ref, sc2_ref, sh2_ref, o_ref):
        x_full = xf_ref[0]            # (S,  C1) f32 — all key/value rows
        x_tile = xt_ref[0]            # (Tq, C1) f32 — this step's query rows

        # ---- cv1: 1x1 conv + folded BN bias + SiLU (MXU + VPU/EUP epilogue)
        w1 = w1_ref[...]
        b1 = b1_ref[...]
        y_full = silu(jnp.dot(x_full.astype(cdt), w1,
                              preferred_element_type=jnp.float32) + b1)  # (S, C2)
        y_tile = silu(jnp.dot(x_tile.astype(cdt), w1,
                              preferred_element_type=jnp.float32) + b1)  # (Tq, C2)
        y_full_c = y_full.astype(cdt)

        # ---- lane-dense q/k/v projections (no per-head d-wide matmuls) -----
        # V in row layout (RHS of A @ V); K^T and Q^T in transposed layout so
        # the energy matmuls below are standard (M,K)x(K,N) dots.
        v_full = jnp.dot(y_full_c, wv_ref[...],
                         preferred_element_type=jnp.float32) + bv_ref[...]   # (S, C2)
        kq_t = lax.dot_general(wkq_ref[...], y_full_c, (((1,), (1,)), ((), ())),
                               preferred_element_type=jnp.float32) + bkq_ref[...]  # (2C2, S)
        q_tile = jnp.dot(y_tile.astype(cdt), wq_ref[...],
                         preferred_element_type=jnp.float32) + bq_ref[...]   # (Tq, C2)

        # Hoisted casts: matmul operands in compute dtype, f32 accumulate.
        v_c = v_full.astype(cdt)
        kq_c = kq_t.astype(cdt)
        q_c = q_tile.astype(cdt)
        p_c = pos_ref[...]            # (Tq, C2), already in compute dtype

        # ---- MHSA per head (softmax kept in f32) ----------------------------
        outs = []
        for h in range(heads):
            lo, hi = h * d, (h + 1) * d
            kt_h = kq_c[lo:hi, :]                 # (d, S)  = K_h^T
            qt_h = kq_c[c2 + lo:c2 + hi, :]       # (d, S)  = Q_h^T
            # energy[i, j] = <q_i, k_j> + <pos_i, q_j>   (matches PyTorch MHSA)
            e = jnp.dot(q_c[:, lo:hi], kt_h, preferred_element_type=jnp.float32)
            e = e + jnp.dot(p_c[:, lo:hi], qt_h, preferred_element_type=jnp.float32)
            e = e - jnp.max(e, axis=-1, keepdims=True)
            w = jnp.exp(e)
            a = w * pl.reciprocal(jnp.sum(w, axis=-1, keepdims=True),
                                  approx=approx_recip)
            outs.append(jnp.dot(a.astype(cdt), v_c[:, lo:hi],
                                preferred_element_type=jnp.float32))      # (Tq, d)
        out = jnp.concatenate(outs, axis=-1)      # (Tq, C2) f32

        # ---- cv2 tail: folded BN affine + SiLU (+ residual), applied once on
        #      the full tile -> single lane-dense store.
        z = silu(out * sc2_ref[...] + sh2_ref[...])
        if use_residual:
            z = z + x_tile
        o_ref[0] = z

    return kernel


@functools.partial(jax.jit,
                   static_argnames=("heads", "shortcut", "q_block", "compute_dtype"))
def bottleneck_transformer_forward(x, params, *, heads, shortcut,
                                   q_block=None, compute_dtype=jnp.bfloat16):
    """x: NCHW float32; params: folded weights (see __main__). Returns NCHW f32."""
    n, c1, hh, ww = x.shape
    c2 = params["w1"].shape[1]
    assert c2 % heads == 0
    d = c2 // heads
    s = hh * ww
    use_residual = bool(shortcut) and (c1 == c2)

    tq = s if q_block is None else int(q_block)
    assert s % tq == 0, "q_block must divide H*W"
    assert tq == s or tq % 8 == 0, "q_block must be a multiple of 8 (sublanes)"
    num_q_tiles = s // tq

    cdt = jnp.dtype(compute_dtype)
    approx_recip = cdt != jnp.dtype(jnp.float32)

    # Channels-last flattened-spatial layout: (N, S, C), C on the lane axis.
    # TODO(synk): drop these two layout transposes if the surrounding graph is NHWC.
    x_cl = jnp.transpose(x, (0, 2, 3, 1)).reshape(n, s, c1)

    # Matmul operands in compute dtype (bf16 on v6e/v7x); bias/affine stay f32.
    w1 = params["w1"].astype(cdt)
    wq = params["wq"].astype(cdt)
    wv = params["wv"].astype(cdt)
    # Fused [Wk^T ; Wq^T] so one matmul against y^T emits both K^T and Q^T.
    wkq = jnp.concatenate([params["wk"].T, params["wq"].T], axis=0).astype(cdt)
    bkq = jnp.concatenate([params["bk"].reshape(c2, 1),
                           params["bq"].reshape(c2, 1)], axis=0).astype(jnp.float32)
    pos = params["pos"].astype(cdt)
    b1, bq, bv = params["b1"], params["bq"], params["bv"]
    sc2, sh2 = params["scale2"], params["shift2"]

    def wspec(shape):
        # Constant index map -> stays VMEM-resident across grid steps.
        return pl.BlockSpec(shape, lambda b, qt: (0, 0))

    in_specs = [
        pl.BlockSpec((1, s, c1), lambda b, qt: (b, 0, 0)),    # x, all rows (keys)
        pl.BlockSpec((1, tq, c1), lambda b, qt: (b, qt, 0)),  # x, query-tile rows
        wspec((c1, c2)), wspec((1, c2)),                      # cv1 folded W, bias
        wspec((c2, c2)), wspec((1, c2)),                      # Wq, bq
        wspec((c2, c2)), wspec((1, c2)),                      # Wv, bv
        wspec((2 * c2, c2)), wspec((2 * c2, 1)),              # [Wk^T;Wq^T], bias col
        pl.BlockSpec((tq, c2), lambda b, qt: (qt, 0)),        # positional term (tile)
        wspec((1, c2)), wspec((1, c2)),                       # cv2 BN scale / shift
    ]

    # Advisory cost estimate so XLA can schedule neighbors around the call.
    mm_flops = 2 * n * num_q_tiles * (
        s * c1 * c2 + tq * c1 * c2            # cv1 (full rows + tile rows)
        + s * c2 * c2 + 2 * s * c2 * c2       # V, [K^T;Q^T]
        + tq * c2 * c2                        # Q (tile rows)
        + 3 * tq * s * c2)                    # energy (cc+cp) and A @ V
    transcendentals = n * num_q_tiles * (heads * tq * s + s * c2 + 2 * tq * c2)
    bytes_accessed = int(
        2 * x_cl.size * x_cl.dtype.itemsize + n * s * c2 * 4
        + (w1.size + wq.size + wv.size + wkq.size + pos.size) * cdt.itemsize
        + (b1.size + bq.size + bv.size + bkq.size + sc2.size + sh2.size) * 4)

    out_cl = pl.pallas_call(
        _make_kernel(heads, d, c2, use_residual, cdt, approx_recip),
        out_shape=jax.ShapeDtypeStruct((n, s, c2), jnp.float32),
        grid=(n, num_q_tiles),
        in_specs=in_specs,
        out_specs=pl.BlockSpec((1, tq, c2), lambda b, qt: (b, qt, 0)),
        compiler_params=pltpu.CompilerParams(
            dimension_semantics=("parallel", "parallel"),
            vmem_limit_bytes=64 * 1024 * 1024),
        cost_estimate=pl.CostEstimate(flops=mm_flops,
                                      transcendentals=transcendentals,
                                      bytes_accessed=bytes_accessed),
    )(x_cl, x_cl, w1, b1, wq, bq, wv, bv, wkq, bkq, pos, sc2, sh2)

    return out_cl.reshape(n, hh, ww, c2).transpose(0, 3, 1, 2)


# ---------------------------------------------------------------------------
# Parameter folding helpers
# ---------------------------------------------------------------------------
def fold_conv_bn(w, gamma, beta, mean, var, eps=1e-5):
    """1x1 conv weight (Cout, Cin), no bias, + eval BN -> (Cin, Cout) W, (1, Cout) bias."""
    scale = gamma / jnp.sqrt(var + eps)
    w_eff = (w * scale[:, None]).T
    b_eff = (beta - mean * scale).reshape(1, -1)
    return w_eff, b_eff


def fold_bn_affine(gamma, beta, mean, var, eps=1e-5):
    scale = gamma / jnp.sqrt(var + eps)
    shift = beta - mean * scale
    return scale.reshape(1, -1), shift.reshape(1, -1)


def make_pos_channels_last(rel_h, rel_w):
    """(1,heads,d,1,W) + (1,heads,d,H,1) -> (S, heads*d) channels-last positional term."""
    heads, d = rel_h.shape[1], rel_h.shape[2]
    pos = (rel_h + rel_w)[0]                        # (heads, d, H, W)
    s = pos.shape[2] * pos.shape[3]
    pos = pos.reshape(heads, d, s)
    return jnp.transpose(pos, (2, 0, 1)).reshape(s, heads * d)


# ---------------------------------------------------------------------------
if __name__ == "__main__":
    key = jax.random.PRNGKey(0)
    n, c1, c2, heads = 2, 8, 8, 4
    hh = ww = 8
    d = c2 // heads
    s = hh * ww
    eps = 1e-5

    keys = jax.random.split(key, 20)
    it = iter(keys)
    x = jax.random.normal(next(it), (n, c1, hh, ww), jnp.float32)

    # cv1: Conv2d(c1, c2, 1, bias=False) + BatchNorm2d(c2) (eval-mode stats)
    w1_raw = 0.5 * jax.random.normal(next(it), (c2, c1), jnp.float32)
    g1 = 1.0 + 0.1 * jax.random.normal(next(it), (c2,), jnp.float32)
    beta1 = 0.1 * jax.random.normal(next(it), (c2,), jnp.float32)
    mu1 = 0.1 * jax.random.normal(next(it), (c2,), jnp.float32)
    var1 = jnp.abs(jax.random.normal(next(it), (c2,), jnp.float32)) + 0.5

    # MHSA q/k/v: Conv2d(c2, c2, 1) with bias
    wq_raw = 0.3 * jax.random.normal(next(it), (c2, c2), jnp.float32)
    bq_raw = 0.1 * jax.random.normal(next(it), (c2,), jnp.float32)
    wk_raw = 0.3 * jax.random.normal(next(it), (c2, c2), jnp.float32)
    bk_raw = 0.1 * jax.random.normal(next(it), (c2,), jnp.float32)
    wv_raw = 0.3 * jax.random.normal(next(it), (c2, c2), jnp.float32)
    bv_raw = 0.1 * jax.random.normal(next(it), (c2,), jnp.float32)

    # MHSA relative-position parameters (resolution = (H, W))
    rel_h = jax.random.normal(next(it), (1, heads, d, 1, ww), jnp.float32)
    rel_w = jax.random.normal(next(it), (1, heads, d, hh, 1), jnp.float32)

    # cv2 tail: BatchNorm2d(c2) + SiLU (eval-mode stats)
    g2 = 1.0 + 0.1 * jax.random.normal(next(it), (c2,), jnp.float32)
    beta2 = 0.1 * jax.random.normal(next(it), (c2,), jnp.float32)
    mu2 = 0.1 * jax.random.normal(next(it), (c2,), jnp.float32)
    var2 = jnp.abs(jax.random.normal(next(it), (c2,), jnp.float32)) + 0.5

    w1, b1 = fold_conv_bn(w1_raw, g1, beta1, mu1, var1, eps)
    scale2, shift2 = fold_bn_affine(g2, beta2, mu2, var2, eps)
    params = dict(
        w1=w1, b1=b1,
        wq=wq_raw.T, bq=bq_raw.reshape(1, c2),
        wk=wk_raw.T, bk=bk_raw.reshape(1, c2),
        wv=wv_raw.T, bv=bv_raw.reshape(1, c2),
        pos=make_pos_channels_last(rel_h, rel_w),
        scale2=scale2, shift2=shift2)

    # pure-JAX reference mirroring the PyTorch module (eval-mode BN)
    def reference(xv, use_shortcut):
        def bn(a, g, b, mu, var):
            sc = g / jnp.sqrt(var + eps)
            return (a - mu[None, :, None, None]) * sc[None, :, None, None] \
                + b[None, :, None, None]

        def silu(a):
            return a * jax.nn.sigmoid(a)

        y = jnp.einsum("oc,nchw->nohw", w1_raw, xv)
        y = silu(bn(y, g1, beta1, mu1, var1))

        q = jnp.einsum("oc,nchw->nohw", wq_raw, y) + bq_raw[None, :, None, None]
        k = jnp.einsum("oc,nchw->nohw", wk_raw, y) + bk_raw[None, :, None, None]
        v = jnp.einsum("oc,nchw->nohw", wv_raw, y) + bv_raw[None, :, None, None]
        qf = q.reshape(n, heads, d, s)
        kf = k.reshape(n, heads, d, s)
        vf = v.reshape(n, heads, d, s)
        cc = jnp.einsum("nhdi,nhdj->nhij", qf, kf)
        pos = (rel_h + rel_w).reshape(heads, d, s)
        cp = jnp.einsum("hdi,nhdj->nhij", pos, qf)
        attn = jax.nn.softmax(cc + cp, axis=-1)
        o = jnp.einsum("nhdj,nhij->nhdi", vf, attn).reshape(n, c2, hh, ww)
        o = silu(bn(o, g2, beta2, mu2, var2))
        return xv + o if use_shortcut else o

    configs = [
        # (shortcut, q_block, compute_dtype, tolerance)
        (True, 32, jnp.float32, 1e-4),      # query-tiled, exact f32
        (False, 32, jnp.float32, 1e-4),
        (True, None, jnp.float32, 1e-4),    # single query tile
        (True, 32, jnp.bfloat16, 1.5e-1),   # bf16 MXU operands, f32 accumulate
    ]
    for shortcut, q_block, cdtype, tol in configs:
        out = jax.block_until_ready(
            bottleneck_transformer_forward(x, params, heads=heads, shortcut=shortcut,
                                           q_block=q_block, compute_dtype=cdtype))
        expected = reference(x, shortcut and c1 == c2)
        assert out.shape == (n, c2, hh, ww)
        err = float(jnp.max(jnp.abs(out - expected)))
        assert err < tol, \
            f"mismatch (shortcut={shortcut}, q_block={q_block}, dtype={cdtype}): {err}"
    print("KERNEL_OK")
</pallas_src>

<mosaic_0001>
module attributes {stable_mosaic.version = 11 : i64} {
  func.func @kernel(%arg0: i32, %arg1: i32, %arg2: memref<1x64x8xf32, #tpu.memory_space<vmem>>, %arg3: memref<1x32x8xf32, #tpu.memory_space<vmem>>, %arg4: memref<8x8xf32, #tpu.memory_space<vmem>>, %arg5: memref<1x8xf32, #tpu.memory_space<vmem>>, %arg6: memref<8x8xf32, #tpu.memory_space<vmem>>, %arg7: memref<1x8xf32, #tpu.memory_space<vmem>>, %arg8: memref<8x8xf32, #tpu.memory_space<vmem>>, %arg9: memref<1x8xf32, #tpu.memory_space<vmem>>, %arg10: memref<16x8xf32, #tpu.memory_space<vmem>>, %arg11: memref<16x1xf32, #tpu.memory_space<vmem>>, %arg12: memref<32x8xf32, #tpu.memory_space<vmem>>, %arg13: memref<1x8xf32, #tpu.memory_space<vmem>>, %arg14: memref<1x8xf32, #tpu.memory_space<vmem>>, %arg15: memref<1x32x8xf32, #tpu.memory_space<vmem>>) attributes {dimension_semantics = [#tpu.dimension_semantics<parallel>, #tpu.dimension_semantics<parallel>], iteration_bounds = array<i64: 2, 2>, scalar_prefetch = 0 : i64, scratch_operands = 0 : i64, tpu.core_type = #tpu.core_type<tc>, window_params = [{transform_indices = @transform_0, window_bounds = array<i64: 1, 64, 8>}, {transform_indices = @transform_1, window_bounds = array<i64: 1, 32, 8>}, {pipeline_mode = #tpu.pipeline_mode<synchronous>, transform_indices = @transform_2, window_bounds = array<i64: 8, 8>}, {pipeline_mode = #tpu.pipeline_mode<synchronous>, transform_indices = @transform_3, window_bounds = array<i64: 1, 8>}, {pipeline_mode = #tpu.pipeline_mode<synchronous>, transform_indices = @transform_4, window_bounds = array<i64: 8, 8>}, {pipeline_mode = #tpu.pipeline_mode<synchronous>, transform_indices = @transform_5, window_bounds = array<i64: 1, 8>}, {pipeline_mode = #tpu.pipeline_mode<synchronous>, transform_indices = @transform_6, window_bounds = array<i64: 8, 8>}, {pipeline_mode = #tpu.pipeline_mode<synchronous>, transform_indices = @transform_7, window_bounds = array<i64: 1, 8>}, {pipeline_mode = #tpu.pipeline_mode<synchronous>, transform_indices = @transform_8, window_bounds = array<i64: 16, 8>}, {pipeline_mode = #tpu.pipeline_mode<synchronous>, transform_indices = @transform_9, window_bounds = array<i64: 16, 1>}, {transform_indices = @transform_10, window_bounds = array<i64: 32, 8>}, {pipeline_mode = #tpu.pipeline_mode<synchronous>, transform_indices = @transform_11, window_bounds = array<i64: 1, 8>}, {pipeline_mode = #tpu.pipeline_mode<synchronous>, transform_indices = @transform_12, window_bounds = array<i64: 1, 8>}, {transform_indices = @transform_13, window_bounds = array<i64: 1, 32, 8>}]} {
    %c0 = arith.constant 0 : index
    %c0_0 = arith.constant 0 : index
    %c0_1 = arith.constant 0 : index
    %0 = vector.load %arg2[%c0, %c0_0, %c0_1] : memref<1x64x8xf32, #tpu.memory_space<vmem>>, vector<1x64x8xf32>
    %1 = vector.shape_cast %0 : vector<1x64x8xf32> to vector<64x8xf32>
    %c0_2 = arith.constant 0 : index
    %c0_3 = arith.constant 0 : index
    %c0_4 = arith.constant 0 : index
    %2 = vector.load %arg3[%c0_2, %c0_3, %c0_4] : memref<1x32x8xf32, #tpu.memory_space<vmem>>, vector<1x32x8xf32>
    %3 = vector.shape_cast %2 : vector<1x32x8xf32> to vector<32x8xf32>
    %c0_5 = arith.constant 0 : index
    %c0_6 = arith.constant 0 : index
    %4 = vector.load %arg4[%c0_5, %c0_6] : memref<8x8xf32, #tpu.memory_space<vmem>>, vector<8x8xf32>
    %c0_7 = arith.constant 0 : index
    %c0_8 = arith.constant 0 : index
    %5 = vector.load %arg5[%c0_7, %c0_8] : memref<1x8xf32, #tpu.memory_space<vmem>>, vector<1x8xf32>
    %cst = arith.constant dense<0.000000e+00> : vector<64x8xf32>
    %6 = tpu.matmul %1, %4, %cst {dimension_numbers = #tpu.dot_dimension_numbers<[1], [0], [0], [1], [0, 0, 1, 1], [], []>} : vector<64x8xf32>, vector<8x8xf32>, vector<64x8xf32> -> vector<64x8xf32>
    %7 = vector.broadcast %5 : vector<1x8xf32> to vector<64x8xf32>
    %8 = arith.addf %6, %7 : vector<64x8xf32>
    %cst_9 = arith.constant 0.000000e+00 : f32
    %9 = vector.broadcast %cst_9 : f32 to vector<64x8xf32>
    %10 = arith.subf %9, %8 : vector<64x8xf32>
    %11 = math.exp %10 : vector<64x8xf32>
    %cst_10 = arith.constant 1.000000e+00 : f32
    %12 = vector.broadcast %cst_10 : f32 to vector<64x8xf32>
    %13 = arith.addf %12, %11 : vector<64x8xf32>
    %14 = tpu.reciprocal %13 : vector<64x8xf32> -> vector<64x8xf32>
    %15 = arith.mulf %8, %14 : vector<64x8xf32>
    %cst_11 = arith.constant dense<0.000000e+00> : vector<32x8xf32>
    %16 = tpu.matmul %3, %4, %cst_11 {dimension_numbers = #tpu.dot_dimension_numbers<[1], [0], [0], [1], [0, 0, 1, 1], [], []>} : vector<32x8xf32>, vector<8x8xf32>, vector<32x8xf32> -> vector<32x8xf32>
    %17 = vector.broadcast %5 : vector<1x8xf32> to vector<32x8xf32>
    %18 = arith.addf %16, %17 : vector<32x8xf32>
    %cst_12 = arith.constant 0.000000e+00 : f32
    %19 = vector.broadcast %cst_12 : f32 to vector<32x8xf32>
    %20 = arith.subf %19, %18 : vector<32x8xf32>
    %21 = math.exp %20 : vector<32x8xf32>
    %cst_13 = arith.constant 1.000000e+00 : f32
    %22 = vector.broadcast %cst_13 : f32 to vector<32x8xf32>
    %23 = arith.addf %22, %21 : vector<32x8xf32>
    %24 = tpu.reciprocal %23 : vector<32x8xf32> -> vector<32x8xf32>
    %25 = arith.mulf %18, %24 : vector<32x8xf32>
    %c0_14 = arith.constant 0 : index
    %c0_15 = arith.constant 0 : index
    %26 = vector.load %arg8[%c0_14, %c0_15] : memref<8x8xf32, #tpu.memory_space<vmem>>, vector<8x8xf32>
    %cst_16 = arith.constant dense<0.000000e+00> : vector<64x8xf32>
    %27 = tpu.matmul %15, %26, %cst_16 {dimension_numbers = #tpu.dot_dimension_numbers<[1], [0], [0], [1], [0, 0, 1, 1], [], []>} : vector<64x8xf32>, vector<8x8xf32>, vector<64x8xf32> -> vector<64x8xf32>
    %c0_17 = arith.constant 0 : index
    %c0_18 = arith.constant 0 : index
    %28 = vector.load %arg9[%c0_17, %c0_18] : memref<1x8xf32, #tpu.memory_space<vmem>>, vector<1x8xf32>
    %29 = vector.broadcast %28 : vector<1x8xf32> to vector<64x8xf32>
    %30 = arith.addf %27, %29 : vector<64x8xf32>
    %c0_19 = arith.constant 0 : index
    %c0_20 = arith.constant 0 : index
    %31 = vector.load %arg10[%c0_19, %c0_20] : memref<16x8xf32, #tpu.memory_space<vmem>>, vector<16x8xf32>
    %cst_21 = arith.constant dense<0.000000e+00> : vector<16x64xf32>
    %32 = tpu.matmul %31, %15, %cst_21 {dimension_numbers = #tpu.dot_dimension_numbers<[1], [1], [0], [0], [0, 0, 1, 0], [], []>} : vector<16x8xf32>, vector<64x8xf32>, vector<16x64xf32> -> vector<16x64xf32>
    %c0_22 = arith.constant 0 : index
    %c0_23 = arith.constant 0 : index
    %33 = vector.load %arg11[%c0_22, %c0_23] : memref<16x1xf32, #tpu.memory_space<vmem>>, vector<16x1xf32>
    %34 = vector.broadcast %33 : vector<16x1xf32> to vector<16x64xf32>
    %35 = arith.addf %32, %34 : vector<16x64xf32>
    %c0_24 = arith.constant 0 : index
    %c0_25 = arith.constant 0 : index
    %36 = vector.load %arg6[%c0_24, %c0_25] : memref<8x8xf32, #tpu.memory_space<vmem>>, vector<8x8xf32>
    %cst_26 = arith.constant dense<0.000000e+00> : vector<32x8xf32>
    %37 = tpu.matmul %25, %36, %cst_26 {dimension_numbers = #tpu.dot_dimension_numbers<[1], [0], [0], [1], [0, 0, 1, 1], [], []>} : vector<32x8xf32>, vector<8x8xf32>, vector<32x8xf32> -> vector<32x8xf32>
    %c0_27 = arith.constant 0 : index
    %c0_28 = arith.constant 0 : index
    %38 = vector.load %arg7[%c0_27, %c0_28] : memref<1x8xf32, #tpu.memory_space<vmem>>, vector<1x8xf32>
    %39 = vector.broadcast %38 : vector<1x8xf32> to vector<32x8xf32>
    %40 = arith.addf %37, %39 : vector<32x8xf32>
    %c0_29 = arith.constant 0 : index
    %c0_30 = arith.constant 0 : index
    %41 = vector.load %arg12[%c0_29, %c0_30] : memref<32x8xf32, #tpu.memory_space<vmem>>, vector<32x8xf32>
    %42 = vector.extract_strided_slice %35 {offsets = [0, 0], sizes = [2, 64], strides = [1, 1]} : vector<16x64xf32> to vector<2x64xf32>
    %43 = vector.extract_strided_slice %35 {offsets = [8, 0], sizes = [2, 64], strides = [1, 1]} : vector<16x64xf32> to vector<2x64xf32>
    %44 = vector.extract_strided_slice %40 {offsets = [0, 0], sizes = [32, 2], strides = [1, 1]} : vector<32x8xf32> to vector<32x2xf32>
    %cst_31 = arith.constant dense<0.000000e+00> : vector<32x64xf32>
    %45 = tpu.matmul %44, %42, %cst_31 {dimension_numbers = #tpu.dot_dimension_numbers<[1], [0], [0], [1], [0, 0, 1, 1], [], []>} : vector<32x2xf32>, vector<2x64xf32>, vector<32x64xf32> -> vector<32x64xf32>
    %46 = vector.extract_strided_slice %41 {offsets = [0, 0], sizes = [32, 2], strides = [1, 1]} : vector<32x8xf32> to vector<32x2xf32>
    %cst_32 = arith.constant dense<0.000000e+00> : vector<32x64xf32>
    %47 = tpu.matmul %46, %43, %cst_32 {dimension_numbers = #tpu.dot_dimension_numbers<[1], [0], [0], [1], [0, 0, 1, 1], [], []>} : vector<32x2xf32>, vector<2x64xf32>, vector<32x64xf32> -> vector<32x64xf32>
    %48 = arith.addf %45, %47 : vector<32x64xf32>
    %cst_33 = arith.constant dense<0xFF800000> : vector<32xf32>
    %49 = vector.multi_reduction <maximumf>, %48, %cst_33 [1] : vector<32x64xf32> to vector<32xf32>
    %50 = vector.shape_cast %49 : vector<32xf32> to vector<32x1xf32>
    %51 = vector.broadcast %50 : vector<32x1xf32> to vector<32x64xf32>
    %52 = arith.subf %48, %51 : vector<32x64xf32>
    %53 = math.exp %52 : vector<32x64xf32>
    %cst_34 = arith.constant dense<0.000000e+00> : vector<32xf32>
    %54 = vector.multi_reduction <add>, %53, %cst_34 [1] : vector<32x64xf32> to vector<32xf32>
    %55 = vector.shape_cast %54 : vector<32xf32> to vector<32x1xf32>
    %56 = tpu.reciprocal %55 : vector<32x1xf32> -> vector<32x1xf32>
    %57 = vector.broadcast %56 : vector<32x1xf32> to vector<32x64xf32>
    %58 = arith.mulf %53, %57 : vector<32x64xf32>
    %59 = vector.extract_strided_slice %30 {offsets = [0, 0], sizes = [64, 2], strides = [1, 1]} : vector<64x8xf32> to vector<64x2xf32>
    %cst_35 = arith.constant dense<0.000000e+00> : vector<32x2xf32>
    %60 = tpu.matmul %58, %59, %cst_35 {dimension_numbers = #tpu.dot_dimension_numbers<[1], [0], [0], [1], [0, 0, 1, 1], [], []>} : vector<32x64xf32>, vector<64x2xf32>, vector<32x2xf32> -> vector<32x2xf32>
    %61 = vector.extract_strided_slice %35 {offsets = [2, 0], sizes = [2, 64], strides = [1, 1]} : vector<16x64xf32> to vector<2x64xf32>
    %62 = vector.extract_strided_slice %35 {offsets = [10, 0], sizes = [2, 64], strides = [1, 1]} : vector<16x64xf32> to vector<2x64xf32>
    %63 = vector.extract_strided_slice %40 {offsets = [0, 2], sizes = [32, 2], strides = [1, 1]} : vector<32x8xf32> to vector<32x2xf32>
    %cst_36 = arith.constant dense<0.000000e+00> : vector<32x64xf32>
    %64 = tpu.matmul %63, %61, %cst_36 {dimension_numbers = #tpu.dot_dimension_numbers<[1], [0], [0], [1], [0, 0, 1, 1], [], []>} : vector<32x2xf32>, vector<2x64xf32>, vector<32x64xf32> -> vector<32x64xf32>
    %65 = vector.extract_strided_slice %41 {offsets = [0, 2], sizes = [32, 2], strides = [1, 1]} : vector<32x8xf32> to vector<32x2xf32>
    %cst_37 = arith.constant dense<0.000000e+00> : vector<32x64xf32>
    %66 = tpu.matmul %65, %62, %cst_37 {dimension_numbers = #tpu.dot_dimension_numbers<[1], [0], [0], [1], [0, 0, 1, 1], [], []>} : vector<32x2xf32>, vector<2x64xf32>, vector<32x64xf32> -> vector<32x64xf32>
    %67 = arith.addf %64, %66 : vector<32x64xf32>
    %cst_38 = arith.constant dense<0xFF800000> : vector<32xf32>
    %68 = vector.multi_reduction <maximumf>, %67, %cst_38 [1] : vector<32x64xf32> to vector<32xf32>
    %69 = vector.shape_cast %68 : vector<32xf32> to vector<32x1xf32>
    %70 = vector.broadcast %69 : vector<32x1xf32> to vector<32x64xf32>
    %71 = arith.subf %67, %70 : vector<32x64xf32>
    %72 = math.exp %71 : vector<32x64xf32>
    %cst_39 = arith.constant dense<0.000000e+00> : vector<32xf32>
    %73 = vector.multi_reduction <add>, %72, %cst_39 [1] : vector<32x64xf32> to vector<32xf32>
    %74 = vector.shape_cast %73 : vector<32xf32> to vector<32x1xf32>
    %75 = tpu.reciprocal %74 : vector<32x1xf32> -> vector<32x1xf32>
    %76 = vector.broadcast %75 : vector<32x1xf32> to vector<32x64xf32>
    %77 = arith.mulf %72, %76 : vector<32x64xf32>
    %78 = vector.extract_strided_slice %30 {offsets = [0, 2], sizes = [64, 2], strides = [1, 1]} : vector<64x8xf32> to vector<64x2xf32>
    %cst_40 = arith.constant dense<0.000000e+00> : vector<32x2xf32>
    %79 = tpu.matmul %77, %78, %cst_40 {dimension_numbers = #tpu.dot_dimension_numbers<[1], [0], [0], [1], [0, 0, 1, 1], [], []>} : vector<32x64xf32>, vector<64x2xf32>, vector<32x2xf32> -> vector<32x2xf32>
    %80 = vector.extract_strided_slice %35 {offsets = [4, 0], sizes = [2, 64], strides = [1, 1]} : vector<16x64xf32> to vector<2x64xf32>
    %81 = vector.extract_strided_slice %35 {offsets = [12, 0], sizes = [2, 64], strides = [1, 1]} : vector<16x64xf32> to vector<2x64xf32>
    %82 = vector.extract_strided_slice %40 {offsets = [0, 4], sizes = [32, 2], strides = [1, 1]} : vector<32x8xf32> to vector<32x2xf32>
    %cst_41 = arith.constant dense<0.000000e+00> : vector<32x64xf32>
    %83 = tpu.matmul %82, %80, %cst_41 {dimension_numbers = #tpu.dot_dimension_numbers<[1], [0], [0], [1], [0, 0, 1, 1], [], []>} : vector<32x2xf32>, vector<2x64xf32>, vector<32x64xf32> -> vector<32x64xf32>
    %84 = vector.extract_strided_slice %41 {offsets = [0, 4], sizes = [32, 2], strides = [1, 1]} : vector<32x8xf32> to vector<32x2xf32>
    %cst_42 = arith.constant dense<0.000000e+00> : vector<32x64xf32>
    %85 = tpu.matmul %84, %81, %cst_42 {dimension_numbers = #tpu.dot_dimension_numbers<[1], [0], [0], [1], [0, 0, 1, 1], [], []>} : vector<32x2xf32>, vector<2x64xf32>, vector<32x64xf32> -> vector<32x64xf32>
    %86 = arith.addf %83, %85 : vector<32x64xf32>
    %cst_43 = arith.constant dense<0xFF800000> : vector<32xf32>
    %87 = vector.multi_reduction <maximumf>, %86, %cst_43 [1] : vector<32x64xf32> to vector<32xf32>
    %88 = vector.shape_cast %87 : vector<32xf32> to vector<32x1xf32>
    %89 = vector.broadcast %88 : vector<32x1xf32> to vector<32x64xf32>
    %90 = arith.subf %86, %89 : vector<32x64xf32>
    %91 = math.exp %90 : vector<32x64xf32>
    %cst_44 = arith.constant dense<0.000000e+00> : vector<32xf32>
    %92 = vector.multi_reduction <add>, %91, %cst_44 [1] : vector<32x64xf32> to vector<32xf32>
    %93 = vector.shape_cast %92 : vector<32xf32> to vector<32x1xf32>
    %94 = tpu.reciprocal %93 : vector<32x1xf32> -> vector<32x1xf32>
    %95 = vector.broadcast %94 : vector<32x1xf32> to vector<32x64xf32>
    %96 = arith.mulf %91, %95 : vector<32x64xf32>
    %97 = vector.extract_strided_slice %30 {offsets = [0, 4], sizes = [64, 2], strides = [1, 1]} : vector<64x8xf32> to vector<64x2xf32>
    %cst_45 = arith.constant dense<0.000000e+00> : vector<32x2xf32>
    %98 = tpu.matmul %96, %97, %cst_45 {dimension_numbers = #tpu.dot_dimension_numbers<[1], [0], [0], [1], [0, 0, 1, 1], [], []>} : vector<32x64xf32>, vector<64x2xf32>, vector<32x2xf32> -> vector<32x2xf32>
    %99 = vector.extract_strided_slice %35 {offsets = [6, 0], sizes = [2, 64], strides = [1, 1]} : vector<16x64xf32> to vector<2x64xf32>
    %100 = vector.extract_strided_slice %35 {offsets = [14, 0], sizes = [2, 64], strides = [1, 1]} : vector<16x64xf32> to vector<2x64xf32>
    %101 = vector.extract_strided_slice %40 {offsets = [0, 6], sizes = [32, 2], strides = [1, 1]} : vector<32x8xf32> to vector<32x2xf32>
    %cst_46 = arith.constant dense<0.000000e+00> : vector<32x64xf32>
    %102 = tpu.matmul %101, %99, %cst_46 {dimension_numbers = #tpu.dot_dimension_numbers<[1], [0], [0], [1], [0, 0, 1, 1], [], []>} : vector<32x2xf32>, vector<2x64xf32>, vector<32x64xf32> -> vector<32x64xf32>
    %103 = vector.extract_strided_slice %41 {offsets = [0, 6], sizes = [32, 2], strides = [1, 1]} : vector<32x8xf32> to vector<32x2xf32>
    %cst_47 = arith.constant dense<0.000000e+00> : vector<32x64xf32>
    %104 = tpu.matmul %103, %100, %cst_47 {dimension_numbers = #tpu.dot_dimension_numbers<[1], [0], [0], [1], [0, 0, 1, 1], [], []>} : vector<32x2xf32>, vector<2x64xf32>, vector<32x64xf32> -> vector<32x64xf32>
    %105 = arith.addf %102, %104 : vector<32x64xf32>
    %cst_48 = arith.constant dense<0xFF800000> : vector<32xf32>
    %106 = vector.multi_reduction <maximumf>, %105, %cst_48 [1] : vector<32x64xf32> to vector<32xf32>
    %107 = vector.shape_cast %106 : vector<32xf32> to vector<32x1xf32>
    %108 = vector.broadcast %107 : vector<32x1xf32> to vector<32x64xf32>
    %109 = arith.subf %105, %108 : vector<32x64xf32>
    %110 = math.exp %109 : vector<32x64xf32>
    %cst_49 = arith.constant dense<0.000000e+00> : vector<32xf32>
    %111 = vector.multi_reduction <add>, %110, %cst_49 [1] : vector<32x64xf32> to vector<32xf32>
    %112 = vector.shape_cast %111 : vector<32xf32> to vector<32x1xf32>
    %113 = tpu.reciprocal %112 : vector<32x1xf32> -> vector<32x1xf32>
    %114 = vector.broadcast %113 : vector<32x1xf32> to vector<32x64xf32>
    %115 = arith.mulf %110, %114 : vector<32x64xf32>
    %116 = vector.extract_strided_slice %30 {offsets = [0, 6], sizes = [64, 2], strides = [1, 1]} : vector<64x8xf32> to vector<64x2xf32>
    %cst_50 = arith.constant dense<0.000000e+00> : vector<32x2xf32>
    %117 = tpu.matmul %115, %116, %cst_50 {dimension_numbers = #tpu.dot_dimension_numbers<[1], [0], [0], [1], [0, 0, 1, 1], [], []>} : vector<32x64xf32>, vector<64x2xf32>, vector<32x2xf32> -> vector<32x2xf32>
    %118 = tpu.concatenate %60, %79, %98, %117 in 1 : vector<32x2xf32>, vector<32x2xf32>, vector<32x2xf32>, vector<32x2xf32> -> vector<32x8xf32>
    %c0_51 = arith.constant 0 : index
    %c0_52 = arith.constant 0 : index
    %119 = vector.load %arg13[%c0_51, %c0_52] : memref<1x8xf32, #tpu.memory_space<vmem>>, vector<1x8xf32>
    %120 = vector.broadcast %119 : vector<1x8xf32> to vector<32x8xf32>
    %121 = arith.mulf %118, %120 : vector<32x8xf32>
    %c0_53 = arith.constant 0 : index
    %c0_54 = arith.constant 0 : index
    %122 = vector.load %arg14[%c0_53, %c0_54] : memref<1x8xf32, #tpu.memory_space<vmem>>, vector<1x8xf32>
    %123 = vector.broadcast %122 : vector<1x8xf32> to vector<32x8xf32>
    %124 = arith.addf %121, %123 : vector<32x8xf32>
    %cst_55 = arith.constant 0.000000e+00 : f32
    %125 = vector.broadcast %cst_55 : f32 to vector<32x8xf32>
    %126 = arith.subf %125, %124 : vector<32x8xf32>
    %127 = math.exp %126 : vector<32x8xf32>
    %cst_56 = arith.constant 1.000000e+00 : f32
    %128 = vector.broadcast %cst_56 : f32 to vector<32x8xf32>
    %129 = arith.addf %128, %127 : vector<32x8xf32>
    %130 = tpu.reciprocal %129 : vector<32x8xf32> -> vector<32x8xf32>
    %131 = arith.mulf %124, %130 : vector<32x8xf32>
    %132 = arith.addf %131, %3 : vector<32x8xf32>
    %c0_57 = arith.constant 0 : index
    %c0_58 = arith.constant 0 : index
    %c0_59 = arith.constant 0 : index
    %133 = vector.load %arg15[%c0_57, %c0_58, %c0_59] : memref<1x32x8xf32, #tpu.memory_space<vmem>>, vector<1x32x8xf32>
    %134 = vector.shape_cast %133 : vector<1x32x8xf32> to vector<32x8xf32>
    %135 = vector.shape_cast %132 : vector<32x8xf32> to vector<1x32x8xf32>
    tpu.vector_store %arg15[%c0_57, %c0_58, %c0_59], %135 {strides = array<i32>} : memref<1x32x8xf32, #tpu.memory_space<vmem>>, vector<1x32x8xf32>,
    return
  }
  func.func @transform_0(%arg0: i32, %arg1: i32) -> (i32, i32, i32) {
    %c0_i32 = arith.constant 0 : i32
    %c0_i32_0 = arith.constant 0 : i32
    %c0_i32_1 = arith.constant 0 : i32
    return %arg0, %c0_i32, %c0_i32_0 : i32, i32, i32
  }
  func.func @transform_1(%arg0: i32, %arg1: i32) -> (i32, i32, i32) {
    %c0_i32 = arith.constant 0 : i32
    %c0_i32_0 = arith.constant 0 : i32
    return %arg0, %arg1, %c0_i32 : i32, i32, i32
  }
  func.func @transform_2(%arg0: i32, %arg1: i32) -> (i32, i32) {
    %c0_i32 = arith.constant 0 : i32
    %c0_i32_0 = arith.constant 0 : i32
    %c0_i32_1 = arith.constant 0 : i32
    return %c0_i32, %c0_i32_0 : i32, i32
  }
  func.func @transform_3(%arg0: i32, %arg1: i32) -> (i32, i32) {
    %c0_i32 = arith.constant 0 : i32
    %c0_i32_0 = arith.constant 0 : i32
    %c0_i32_1 = arith.constant 0 : i32
    return %c0_i32, %c0_i32_0 : i32, i32
  }
  func.func @transform_4(%arg0: i32, %arg1: i32) -> (i32, i32) {
    %c0_i32 = arith.constant 0 : i32
    %c0_i32_0 = arith.constant 0 : i32
    %c0_i32_1 = arith.constant 0 : i32
    return %c0_i32, %c0_i32_0 : i32, i32
  }
  func.func @transform_5(%arg0: i32, %arg1: i32) -> (i32, i32) {
    %c0_i32 = arith.constant 0 : i32
    %c0_i32_0 = arith.constant 0 : i32
    %c0_i32_1 = arith.constant 0 : i32
    return %c0_i32, %c0_i32_0 : i32, i32
  }
  func.func @transform_6(%arg0: i32, %arg1: i32) -> (i32, i32) {
    %c0_i32 = arith.constant 0 : i32
    %c0_i32_0 = arith.constant 0 : i32
    %c0_i32_1 = arith.constant 0 : i32
    return %c0_i32, %c0_i32_0 : i32, i32
  }
  func.func @transform_7(%arg0: i32, %arg1: i32) -> (i32, i32) {
    %c0_i32 = arith.constant 0 : i32
    %c0_i32_0 = arith.constant 0 : i32
    %c0_i32_1 = arith.constant 0 : i32
    return %c0_i32, %c0_i32_0 : i32, i32
  }
  func.func @transform_8(%arg0: i32, %arg1: i32) -> (i32, i32) {
    %c0_i32 = arith.constant 0 : i32
    %c0_i32_0 = arith.constant 0 : i32
    %c0_i32_1 = arith.constant 0 : i32
    return %c0_i32, %c0_i32_0 : i32, i32
  }
  func.func @transform_9(%arg0: i32, %arg1: i32) -> (i32, i32) {
    %c0_i32 = arith.constant 0 : i32
    %c0_i32_0 = arith.constant 0 : i32
    %c0_i32_1 = arith.constant 0 : i32
    return %c0_i32, %c0_i32_0 : i32, i32
  }
  func.func @transform_10(%arg0: i32, %arg1: i32) -> (i32, i32) {
    %c0_i32 = arith.constant 0 : i32
    %c0_i32_0 = arith.constant 0 : i32
    return %arg1, %c0_i32 : i32, i32
  }
  func.func @transform_11(%arg0: i32, %arg1: i32) -> (i32, i32) {
    %c0_i32 = arith.constant 0 : i32
    %c0_i32_0 = arith.constant 0 : i32
    %c0_i32_1 = arith.constant 0 : i32
    return %c0_i32, %c0_i32_0 : i32, i32
  }
  func.func @transform_12(%arg0: i32, %arg1: i32) -> (i32, i32) {
    %c0_i32 = arith.constant 0 : i32
    %c0_i32_0 = arith.constant 0 : i32
    %c0_i32_1 = arith.constant 0 : i32
    return %c0_i32, %c0_i32_0 : i32, i32
  }
  func.func @transform_13(%arg0: i32, %arg1: i32) -> (i32, i32, i32) {
    %c0_i32 = arith.constant 0 : i32
    %c0_i32_0 = arith.constant 0 : i32
    return %arg0, %arg1, %c0_i32 : i32, i32, i32
  }
}

</mosaic_0001>

<bundles_post_ra>
// kernel: bottleneck_transformer_forward.1
= control target key start
LH: loop header
LB: loop body
LE: loop exit
PB: predicated region body
PF: predicated region fallthrough
CT: control target
= control target key end

     0   :  { %s2791_s25 = smov 0   ;;  %s2793_s26 = smov 0   ;;  %s3498_s0 = inlined_call_operand.vmem [shape: f32[2,64,8], index: 0, kind: input, shape index: {}, may-alias: {0,1}]   ;;  %s3499_s1 = inlined_call_operand.vmem [shape: f32[2,64,8], index: 1, kind: input, shape index: {}, may-alias: {0,1}]   ;;  %s3500_s2 = inlined_call_operand.vmem [shape: f32[8,8], index: 2, kind: input, shape index: {}]   ;;  %s3501_s3 = inlined_call_operand.vmem [shape: f32[1,8], index: 3, kind: input, shape index: {}]   ;;  %s3502_s4 = inlined_call_operand.vmem [shape: f32[8,8], index: 4, kind: input, shape index: {}]   ;;  %s3503_s5 = inlined_call_operand.vmem [shape: f32[1,8], index: 5, kind: input, shape index: {}]   ;;  %s3504_s6 = inlined_call_operand.vmem [shape: f32[8,8], index: 6, kind: input, shape index: {}]   ;;  %s3505_s7 = inlined_call_operand.vmem [shape: f32[1,8], index: 7, kind: input, shape index: {}]   ;;  %s3506_s8 = inlined_call_operand.vmem [shape: f32[16,8], index: 8, kind: input, shape index: {}]   ;;  %s3507_s9 = inlined_call_operand.vmem [shape: f32[16,1], index: 9, kind: input, shape index: {}]   ;;  %s3508_s10 = inlined_call_operand.vmem [shape: f32[64,8], index: 10, kind: input, shape index: {}]   ;;  %s3509_s11 = inlined_call_operand.vmem [shape: f32[1,8], index: 11, kind: input, shape index: {}]   ;;  %s3510_s12 = inlined_call_operand.vmem [shape: f32[1,8], index: 12, kind: input, shape index: {}]   ;;  %s3511_s13 = inlined_call_operand.vmem [shape: f32[2,64,8], index: 13, kind: output, shape index: {}]  }
   0x1   :  { %s2795_s27 = smov 0   ;;  %s2797_s28 = smov 0  }
   0x2   :  { %s2799_s29 = smov 0  }
   0x3 LB: > { %s32_s30 = sadd.s32 1, %s2704_s27  ;;  %s35_s14 = sadd.s32 1, %s2708_s28  ;;  %s2712_s29 = sphi %s2799_s29, %s23_s29   ;;  %s2708_s28 = sphi %s2797_s28, %s3525_s28   ;;  %s2704_s27 = sphi %s2795_s27, %s3524_s27   ;;  %s2700_s26 = sphi %s2793_s26, %s3523_s26   ;;  %s2696_s25 = sphi %s2791_s25, %s3522_s25  }
   0x4   : > { %p33_p0 = scmp.ge.s32.totalorder %s32_s30, 2  ;;  %p2324_p1 = scmp.ge.s32.totalorder %s2712_s29, 1 }
   0x5   : > { %p429_p2 = scmp.lt.s32.totalorder %s2712_s29, 5 }
   0x6   : > { %s3527_s30 = smov (%p33_p0, %s32_s30), 0  ;;  %s3529_s14 = smov (!%p33_p0, %s35_s14), %s2708_s28 }
   0x7   : > { %p430_p3 = pnand %p2324_p1, %p429_p2  ;;  %p37_p4 = scmp.ge.s32.totalorder %s3529_s14, 2 }
   0x8   : > { %p491_p5 = scmp.lt.s32.totalorder (!%p430_p3), %s2700_s26, 1  ;;  %s2327_s17 = sshll.u32 (!%p430_p3), %s2696_s25, 2 }
   0x9   : > { %s3531_s14 = smov (%p37_p4, %s3529_s14), 0  ;;  %433 = sbr.rel (%p430_p3) target bundleno = 1705 (0x6a9), region = 72 }
   0xa   : > { %p499_p6 = scmp.lt.s32.totalorder (!%p430_p3), %s2327_s17, 7  ;;  %s2717_s15 = smov (!%p430_p3), 122  }
   0xe   : > { %v534_v0 = vld [vmem:[%s3500_s2] sm:$0xff]  ;;  %s3533_s26 = smov (!%p491_p5, %s2700_s26), 1  ;;  %s3535_s17 = smov (!%p499_p6, %s2327_s17), 7  ;;  %vm539_vm0 = vcmask 64512  }
   0xf   : > { %579 = vmatpush.msra.mxu0 %v534_v0  ;;  %784 = vmatpush.msra.mxu1 %v534_v0  ;;  %s2427_s18 = sshll.u32 %s3533_s26, 6  ;;  %s2328_s19 = sshll.u32 %s3533_s26, 3  ;;  %v2859_v13 = vld [vmem:[%s3501_s3] ss:$0 sm:$0xff] }
  0x10   : > { %s495_s22 = scalar_lea.vmem %s3498_s0, %s2427_s18  ;;  %s2830_s23 = sadd.s32 %s2328_s19, %s3535_s17  ;;  %v874_v16 = vld [vmem:[%s3504_s6] sm:$0xff] }
  0x11   : > { %v522_v1 = vld [vmem:[%s495_s22] sm:$0xff]  ;;  %s2329_s24 = sshll.u32 %s2830_s23, 3  ;;  %v523_v3 = vld [vmem:[%s495_s22 + $0x8] sm:$0xff]  ;;  %v524_v5 = vld [vmem:[%s495_s22 + $0x10] sm:$0xff]  ;;  %918 = vmatpush.msra.mxu2 %v874_v16  ;;  %s2331_s25 = sshll.u32 %s3535_s17, 3 }
  0x12   : > { %2335 = vmatmul.msk.f32.vlgmr.msra.gmra.mxu0 %vm539_vm0, %v522_v1  ;;  %s2839_s16 = scalar_lea.vmem %s3499_s1, %s2329_s24  ;;  %v525_v7 = vld [vmem:[%s495_s22 + $0x18] sm:$0xff]  ;;  %v526_v9 = vld [vmem:[%s495_s22 + $0x20] sm:$0xff]  ;;  %v527_v10 = vld [vmem:[%s495_s22 + $0x28] sm:$0xff]  ;;  %s3099_s18 = scalar_lea.vmem %s3508_s10, %s2331_s25 }
  0x13   : > { %v530_v2 = vld [vmem:[%s2839_s16] sm:$0xff]  ;;  %v531_v4 = vld [vmem:[%s2839_s16 + $0x8] sm:$0xff]  ;;  %v532_v6 = vld [vmem:[%s2839_s16 + $0x10] sm:$0xff]  ;;  %s2715_s19 = smov 126   ;;  %s2716_s25 = smov 124  }
  0x14   : > { %2343 = vmatmul.msk.f32.vlgmr.msra.gmra.mxu1 %vm539_vm0, %v530_v2  ;;  %v533_v8 = vld [vmem:[%s2839_s16 + $0x18] sm:$0xff]  ;;  %v528_v11 = vld [vmem:[%s495_s22 + $0x30] sm:$0xff]  ;;  %s2718_s26 = smov 2  }
  0x15   : > { %v529_v12 = vld [vmem:[%s495_s22 + $0x38] sm:$0xff] }
  0x1a   : > { %2336 = vmatmul.msk.f32.gmra.mxu0 %vm539_vm0, %v523_v3 }
  0x1c   : > { %2344 = vmatmul.msk.f32.gmra.mxu1 %vm539_vm0, %v531_v4 }
  0x22   : > { %2337 = vmatmul.msk.f32.gmra.mxu0 %vm539_vm0, %v524_v5 }
  0x24   : > { %2345 = vmatmul.msk.f32.gmra.mxu1 %vm539_vm0, %v532_v6 }
  0x2a   : > { %2338 = vmatmul.msk.f32.gmra.mxu0 %vm539_vm0, %v525_v7 }
  0x2c   : > { %2346 = vmatmul.msk.f32.gmra.mxu1 %vm539_vm0, %v533_v8 }
  0x32   : > { %2339 = vmatmul.msk.f32.gmra.mxu0 %vm539_vm0, %v526_v9 }
  0x3a   : > { %2340 = vmatmul.msk.f32.gmra.mxu0 %vm539_vm0, %v527_v10 }
  0x42   : > { %2341 = vmatmul.msk.f32.gmra.mxu0 %vm539_vm0, %v528_v11 }
  0x4a   : > { %2342 = vmatmul.msk.f32.gmra.mxu0 %vm539_vm0, %v529_v12 }
  0x8f   : > { %v581_v14 = vpop.f32.mrf.mxu0 }
  0x90   : > { %v2862_v15 = vadd.f32 %v2859_v13, %v581_v14 }
  0x91   : > { %v786_v18 = vpop.f32.mrf.mxu1 }
  0x92   : > { %v605_v17 = vsub.f32 0.0, %v2862_v15  ;;  %v2869_v20 = vadd.f32 %v2859_v13, %v786_v18 }
  0x94   : > { %v613_v19 = vmul.f32 1.442695, %v605_v17  ;;  %v798_v21 = vsub.f32 0.0, %v2869_v20 }
  0x96   : > { %2542 = vpow2.f32 %v613_v19  ;;  %v802_v24 = vmul.f32 1.442695, %v798_v21 }
  0x97   : > { %v584_v22 = vpop.f32.mrf.mxu0 }
  0x98   : > { %v2873_v23 = vadd.f32 %v2859_v13, %v584_v22  ;;  %2544 = vpow2.f32 %v802_v24 }
  0x99   : > { %v789_v28 = vpop.f32.mrf.mxu1 }
  0x9a   : > { %v606_v25 = vsub.f32 0.0, %v2873_v23  ;;  %v2877_v30 = vadd.f32 %v2859_v13, %v789_v28 }
  0x9c   : > { %v2543_v26 = vpop.eup %2542  ;;  %v615_v27 = vmul.f32 1.442695, %v606_v25  ;;  %v799_v34 = vsub.f32 0.0, %v2877_v30 }
  0x9d   : > { %v629_v29 = vadd.f32 1.0, %v2543_v26 }
  0x9e   : > { %2546 = vpow2.f32 %v615_v27  ;;  %v2545_v32 = vpop.eup %2544  ;;  %v804_v37 = vmul.f32 1.442695, %v799_v34 }
  0x9f   : > { %2548 = vrcp.f32 %v629_v29  ;;  %v587_v31 = vpop.f32.mrf.mxu0  ;;  %v2883_v35 = vadd.f32 1.0, %v2545_v32  ;;  %v646_v50 = vand.u32 2147483647, %v629_v29  ;;  %v648_v51 = vand.u32 2147483648, %v629_v29 }
  0xa0   : > { %v2880_v33 = vadd.f32 %v2859_v13, %v587_v31  ;;  %vm642_vm2 = vweird.f32 %v629_v29 }
  0xa1   : > { %2550 = vrcp.f32 %v2883_v35  ;;  %v792_v40 = vpop.f32.mrf.mxu1  ;;  %v649_v62 = vor.u32 1.1754944e-38, %v648_v51  ;;  %vm647_vm4 = vcmp.eq.f32.partialorder %v646_v50, 8.507059e+37  ;;  %vm819_vm6 = vweird.f32 %v2883_v35 }
  0xa2   : > { %v607_v36 = vsub.f32 0.0, %v2880_v33  ;;  %2552 = vpow2.f32 %v804_v37  ;;  %v2890_v43 = vadd.f32 %v2859_v13, %v792_v40  ;;  %v823_v16 = vand.u32 2147483647, %v2883_v35 }
  0xa3   : > { %v825_v21 = vand.u32 2147483648, %v2883_v35 }
  0xa4   : > { %v2547_v38 = vpop.eup %2546  ;;  %v617_v39 = vmul.f32 1.442695, %v607_v36  ;;  %v800_v48 = vsub.f32 0.0, %v2890_v43  ;;  %vm2936_vm10 = vcmp.eq.f32.partialorder %v823_v16, 8.507059e+37  ;;  %v987_v36 = vld [vmem:[%s3502_s4] sm:$0xff] }
  0xa5   : > { %v2549_v41 = vpop.eup %2548  ;;  %v2887_v42 = vadd.f32 1.0, %v2547_v38  ;;  %1019 = vmatpush.msrb.mxu1 %v987_v36 }
  0xa6   : > { %v638_v44 = vmul.f32 %v2549_v41, %v629_v29  ;;  %2554 = vpow2.f32 %v617_v39  ;;  %vm643_vm1 = vweird.f32 %v2549_v41  ;;  %v806_v56 = vmul.f32 1.442695, %v800_v48 }
  0xa7   : > { %2556 = vrcp.f32 %v2887_v42  ;;  %v590_v45 = vpop.f32.mrf.mxu0  ;;  %v2897_v49 = vpop.eup %2550  ;;  %vm644_vm3 = vmor %vm642_vm2, %vm643_vm1  ;;  %v662_v4 = vand.u32 2147483648, %v2887_v42  ;;  %vm656_vm5 = vweird.f32 %v2887_v42  ;;  %v660_v9 = vand.u32 2147483647, %v2887_v42 }
  0xa8   : > { %v639_v46 = vsub.f32 1.0, %v638_v44  ;;  %v2894_v47 = vadd.f32 %v2859_v13, %v590_v45  ;;  %v2553_v52 = vpop.eup %2552  ;;  %v815_v55 = vmul.f32 %v2897_v49, %v2883_v35  ;;  %2558 = vpow2.f32 %v806_v56 }
  0xa9   : > { %v2902_v57 = vadd.f32 1.0, %v2553_v52  ;;  %vm820_vm7 = vweird.f32 %v2897_v49  ;;  %v663_v18 = vor.u32 1.1754944e-38, %v662_v4  ;;  %v795_v29 = vpop.f32.mrf.mxu1  ;;  %v826_v35 = vor.u32 1.1754944e-38, %v825_v21 }
  0xaa   : > { %v640_v53 = vmul.f32 %v2549_v41, %v639_v46  ;;  %v608_v54 = vsub.f32 0.0, %v2894_v47  ;;  %v816_v0 = vsub.f32 1.0, %v815_v55  ;;  %vm2923_vm9 = vmor %vm819_vm6, %vm820_vm7  ;;  %vm661_vm12 = vcmp.eq.f32.partialorder %v660_v9, 8.507059e+37 }
  0xab   : > { %2560 = vrcp.f32 %v2902_v57  ;;  %vm833_vm15 = vweird.f32 %v2902_v57  ;;  %v839_v55 = vand.u32 2147483648, %v2902_v57 }
  0xac   : > { %v2555_v58 = vpop.eup %2554  ;;  %v641_v59 = vadd.f32 %v2549_v41, %v640_v53  ;;  %v619_v60 = vmul.f32 1.442695, %v608_v54  ;;  %v817_v10 = vmul.f32 %v2897_v49, %v816_v0 }
  0xad   : > { %v2557_v61 = vpop.eup %2556  ;;  %v2905_v63 = vadd.f32 1.0, %v2555_v58 }
  0xae   : > { %v645_v1 = vsel %vm644_vm3, %v2549_v41, %v641_v59  ;;  %v652_v2 = vmul.f32 %v2557_v61, %v2887_v42  ;;  %2562 = vpow2.f32 %v619_v60  ;;  %v2559_v11 = vpop.eup %2558  ;;  %vm657_vm8 = vweird.f32 %v2557_v61 }
  0xaf   : > { %v650_v3 = vsel %vm647_vm4, %v649_v62, %v645_v1  ;;  %2564 = vrcp.f32 %v2905_v63  ;;  %v593_v5 = vpop.f32.mrf.mxu0  ;;  %v818_v19 = vadd.f32 %v2897_v49, %v817_v10  ;;  %v2934_v22 = vadd.f32 1.0, %v2559_v11  ;;  %vm658_vm11 = vmor %vm656_vm5, %vm657_vm8 }
  0xb0   : > { %v2912_v6 = vmul.f32 %v650_v3, %v2862_v15  ;;  %v653_v7 = vsub.f32 1.0, %v652_v2  ;;  %v2916_v8 = vadd.f32 %v2859_v13, %v593_v5  ;;  %v674_v40 = vand.u32 2147483647, %v2905_v63 }
  0xb1   : > { %v2930_v17 = vpop.eup %2560  ;;  %v822_v34 = vsel %vm2923_vm9, %v2897_v49, %v818_v19  ;;  %2566 = vrcp.f32 %v2934_v22  ;;  %v2958_v42 = vadd.f32 %v2859_v13, %v795_v29  ;;  %v676_v46 = vand.u32 2147483648, %v2905_v63 }
  0xb2   : > { %v654_v12 = vmul.f32 %v2557_v61, %v653_v7  ;;  %v609_v14 = vsub.f32 0.0, %v2916_v8  ;;  %2347 = vmatmul.msk.f32.vlgmr.msra.gmra.mxu2 %vm539_vm0, %v2912_v6  ;;  %v829_v28 = vmul.f32 %v2930_v17, %v2902_v57  ;;  %v827_v48 = vsel %vm2936_vm10, %v826_v35, %v822_v34 }
  0xb3   : > { %vm670_vm13 = vweird.f32 %v2905_v63  ;;  %v870_v49 = vmul.f32 %v827_v48, %v2869_v20  ;;  %vm834_vm1 = vweird.f32 %v2930_v17  ;;  %v837_v20 = vand.u32 2147483647, %v2902_v57 }
  0xb4   : > { %v2563_v24 = vpop.eup %2562  ;;  %v655_v25 = vadd.f32 %v2557_v61, %v654_v12  ;;  %v621_v26 = vmul.f32 1.442695, %v609_v14  ;;  %v830_v51 = vsub.f32 1.0, %v829_v28  ;;  %vm675_vm2 = vcmp.eq.f32.partialorder %v674_v40, 8.507059e+37  ;;  %vm2997_vm5 = vmor %vm833_vm15, %vm834_vm1 }
  0xb5   : > { %v2565_v31 = vpop.eup %2564  ;;  %v2945_v32 = vadd.f32 1.0, %v2563_v24  ;;  %2365 = vmatmul.msk.f32.vlgmr.msrb.gmra.mxu1 %vm539_vm0, %v870_v49  ;;  %v677_v59 = vor.u32 1.1754944e-38, %v676_v46  ;;  %v801_v60 = vsub.f32 0.0, %v2958_v42  ;;  %v840_v5 = vor.u32 1.1754944e-38, %v839_v55 }
  0xb6   : > { %v659_v37 = vsel %vm658_vm11, %v2557_v61, %v655_v25  ;;  %v666_v38 = vmul.f32 %v2565_v31, %v2905_v63  ;;  %2568 = vpow2.f32 %v621_v26  ;;  %vm671_vm14 = vweird.f32 %v2565_v31 }
  0xb7   : > { %v664_v39 = vsel %vm661_vm12, %v663_v18, %v659_v37  ;;  %2570 = vrcp.f32 %v2945_v32  ;;  %v596_v41 = vpop.f32.mrf.mxu0  ;;  %v831_v54 = vmul.f32 %v2930_v17, %v830_v51  ;;  %vm672_vm3 = vmor %vm670_vm13, %vm671_vm14  ;;  %vm684_vm4 = vweird.f32 %v2945_v32 }
  0xb8   : > { %v2961_v44 = vmul.f32 %v664_v39, %v2873_v23  ;;  %v667_v45 = vsub.f32 1.0, %v666_v38  ;;  %v2969_v50 = vadd.f32 %v2859_v13, %v596_v41  ;;  %v2975_v23 = vpop.eup %2566  ;;  %v688_v9 = vand.u32 2147483647, %v2945_v32 }
  0xb9   : > { %v832_v1 = vadd.f32 %v2930_v17, %v831_v54  ;;  %v843_v2 = vmul.f32 %v2975_v23, %v2934_v22  ;;  %vm838_vm6 = vcmp.eq.f32.partialorder %v837_v20, 8.507059e+37  ;;  %v808_v14 = vmul.f32 1.442695, %v801_v60 }
  0xba   : > { %v668_v52 = vmul.f32 %v2565_v31, %v667_v45  ;;  %2348 = vmatmul.msk.f32.gmra.mxu2 %vm539_vm0, %v2961_v44  ;;  %v610_v53 = vsub.f32 0.0, %v2969_v50  ;;  %v690_v57 = vand.u32 2147483648, %v2945_v32  ;;  %vm847_vm8 = vweird.f32 %v2934_v22 }
  0xbb   : > { %v836_v15 = vsel %vm2997_vm5, %v2930_v17, %v832_v1  ;;  %v844_v18 = vsub.f32 1.0, %v843_v2  ;;  %vm848_vm9 = vweird.f32 %v2975_v23  ;;  %v851_v27 = vand.u32 2147483647, %v2934_v22 }
  0xbc   : > { %v2569_v56 = vpop.eup %2568  ;;  %v669_v58 = vadd.f32 %v2565_v31, %v668_v52  ;;  %v623_v0 = vmul.f32 1.442695, %v610_v53  ;;  %v841_v21 = vsel %vm838_vm6, %v840_v5, %v836_v15  ;;  %vm3020_vm10 = vmor %vm847_vm8, %vm848_vm9  ;;  %v853_v28 = vand.u32 2147483648, %v2934_v22 }
  0xbd   : > { %v2571_v61 = vpop.eup %2570  ;;  %v2986_v62 = vadd.f32 1.0, %v2569_v56  ;;  %v845_v25 = vmul.f32 %v2975_v23, %v844_v18  ;;  %vm689_vm12 = vcmp.eq.f32.partialorder %v688_v9, 8.507059e+37  ;;  %vm3031_vm13 = vcmp.eq.f32.partialorder %v851_v27, 8.507059e+37 }
  0xbe   : > { %v673_v3 = vsel %vm672_vm3, %v2565_v31, %v669_v58  ;;  %v680_v4 = vmul.f32 %v2571_v61, %v2945_v32  ;;  %vm685_vm7 = vweird.f32 %v2571_v61  ;;  %v854_v46 = vor.u32 1.1754944e-38, %v853_v28 }
  0xbf   : > { %v678_v7 = vsel %vm675_vm2, %v677_v59, %v673_v3  ;;  %2572 = vrcp.f32 %v2986_v62  ;;  %v599_v10 = vpop.f32.mrf.mxu0  ;;  %vm686_vm11 = vmor %vm684_vm4, %vm685_vm7  ;;  %v846_v34 = vadd.f32 %v2975_v23, %v845_v25  ;;  %v702_v49 = vand.u32 2147483647, %v2986_v62 }
  0xc0   : > { %v3004_v11 = vmul.f32 %v678_v7, %v2880_v33  ;;  %v681_v12 = vsub.f32 1.0, %v680_v4  ;;  %2574 = vpow2.f32 %v623_v0  ;;  %v3011_v16 = vadd.f32 %v2859_v13, %v599_v10 }
  0xc1   : > { %v871_v33 = vmul.f32 %v841_v21, %v2877_v30  ;;  %2576 = vpow2.f32 %v808_v14  ;;  %v691_v30 = vor.u32 1.1754944e-38, %v690_v57  ;;  %v850_v32 = vsel %vm3020_vm10, %v2975_v23, %v846_v34 }
  0xc2   : > { %v682_v19 = vmul.f32 %v2571_v61, %v681_v12  ;;  %2349 = vmatmul.msk.f32.gmra.mxu2 %vm539_vm0, %v3004_v11  ;;  %v611_v24 = vsub.f32 0.0, %v3011_v16  ;;  %v704_v51 = vand.u32 2147483648, %v2986_v62  ;;  %v855_v23 = vsel %vm3031_vm13, %v854_v46, %v850_v32 }
  0xc3   : > { %2366 = vmatmul.msk.f32.gmra.mxu1 %vm539_vm0, %v871_v33  ;;  %vm698_vm15 = vweird.f32 %v2986_v62  ;;  %vm703_vm2 = vcmp.eq.f32.partialorder %v702_v49, 8.507059e+37 }
  0xc4   : > { %v683_v17 = vadd.f32 %v2571_v61, %v682_v19  ;;  %v625_v31 = vmul.f32 1.442695, %v611_v24  ;;  %v705_v58 = vor.u32 1.1754944e-38, %v704_v51 }
  0xc5   : > { %v2573_v29 = vpop.eup %2572 }
  0xc6   : > { %v2575_v35 = vpop.eup %2574  ;;  %v687_v36 = vsel %vm686_vm11, %v2571_v61, %v683_v17  ;;  %v694_v37 = vmul.f32 %v2573_v29, %v2986_v62  ;;  %2578 = vpow2.f32 %v625_v31  ;;  %vm699_vm14 = vweird.f32 %v2573_v29 }
  0xc7   : > { %v692_v22 = vsel %vm689_vm12, %v691_v30, %v687_v36  ;;  %v634_v39 = vadd.f32 1.0, %v2575_v35  ;;  %v602_v40 = vpop.f32.mrf.mxu0  ;;  %v2577_v52 = vpop.eup %2576  ;;  %vm700_vm1 = vmor %vm698_vm15, %vm699_vm14 }
  0xc8   : > { %v3039_v41 = vmul.f32 %v692_v22, %v2894_v47  ;;  %v695_v45 = vsub.f32 1.0, %v694_v37  ;;  %v3042_v48 = vadd.f32 %v2859_v13, %v602_v40  ;;  %v872_v47 = vmul.f32 %v855_v23, %v2890_v43 }
  0xc9   : > { %2580 = vrcp.f32 %v634_v39  ;;  %v813_v13 = vadd.f32 1.0, %v2577_v52  ;;  %v718_v3 = vand.u32 2147483648, %v634_v39  ;;  %v716_v5 = vand.u32 2147483647, %v634_v39 }
  0xca   : > { %v696_v53 = vmul.f32 %v2573_v29, %v695_v45  ;;  %v612_v54 = vsub.f32 0.0, %v3042_v48  ;;  %2350 = vmatmul.msk.f32.gmra.mxu2 %vm539_vm0, %v3039_v41  ;;  %vm712_vm4 = vweird.f32 %v634_v39 }
  0xcb   : > { %2582 = vrcp.f32 %v813_v13  ;;  %2367 = vmatmul.msk.f32.gmra.mxu1 %vm539_vm0, %v872_v47  ;;  %vm861_vm5 = vweird.f32 %v813_v13  ;;  %v867_v10 = vand.u32 2147483648, %v813_v13  ;;  %v865_v57 = vand.u32 2147483647, %v813_v13  ;;  %v945_v47 = vld [vmem:[%s3506_s8 + $0x8] sm:$0xff] }
  0xcc   : > { %v697_v20 = vadd.f32 %v2573_v29, %v696_v53  ;;  %v627_v55 = vmul.f32 1.442695, %v612_v54  ;;  %v2579_v56 = vpop.eup %2578  ;;  %v719_v15 = vor.u32 1.1754944e-38, %v718_v3  ;;  %vm717_vm8 = vcmp.eq.f32.partialorder %v716_v5, 8.507059e+37  ;;  %v946_v54 = vld [vmem:[%s3507_s9] sm:$0xff] }
  0xcd   : > { %v635_v60 = vadd.f32 1.0, %v2579_v56  ;;  %v868_v25 = vor.u32 1.1754944e-38, %v867_v10  ;;  %vm866_vm10 = vcmp.eq.f32.partialorder %v865_v57, 8.507059e+37  ;;  %v2714_v53 = vmov 0   ;;  %v3143_v57 = vld [vmem:[%s3099_s18 + $0x18] sm:$0xff] }
  0xce   : > { %v701_v59 = vsel %vm700_vm1, %v2573_v29, %v697_v20  ;;  %2584 = vpow2.f32 %v627_v55  ;;  %2476 = vset.pattern.permute.xlu0 %v2714_v53  ;;  %v2538_v20 = vld [vmem:[%s3505_s7] ss:$0 sm:$0xff] }
  0xcf   : > { %v2581_v61 = vpop.eup %2580  ;;  %v706_v0 = vsel %vm703_vm2, %v705_v58, %v701_v59  ;;  %2586 = vrcp.f32 %v635_v60  ;;  %v732_v26 = vand.u32 2147483648, %v635_v60  ;;  %v730_v29 = vand.u32 2147483647, %v635_v60  ;;  %v3117_v59 = vld [vmem:[%s3099_s18 + $0x10] sm:$0xff] }
  0xd0   : > { %v3055_v1 = vmul.f32 %v706_v0, %v2916_v8  ;;  %v708_v43 = vmul.f32 %v2581_v61, %v634_v39  ;;  %vm713_vm3 = vweird.f32 %v2581_v61  ;;  %vm726_vm12 = vweird.f32 %v635_v60  ;;  %v3124_v0 = vld [vmem:[%s3099_s18 + $0x8] sm:$0xff] }
  0xd1   : > { %v2583_v62 = vpop.eup %2582  ;;  %vm714_vm7 = vmor %vm712_vm4, %vm713_vm3  ;;  %v733_v36 = vor.u32 1.1754944e-38, %v732_v26  ;;  %vm731_vm14 = vcmp.eq.f32.partialorder %v730_v29, 8.507059e+37  ;;  %1267 = vrot.lane.b32.xlu2 %v3124_v0, %s2715_s19  ;;  %vm1050_vm4 = vcmask 1041408  }
  0xd2   : > { %v709_v2 = vsub.f32 1.0, %v708_v43  ;;  %2351 = vmatmul.msk.f32.gmra.mxu2 %vm539_vm0, %v3055_v1  ;;  %v857_v7 = vmul.f32 %v2583_v62, %v813_v13  ;;  %vm862_vm6 = vweird.f32 %v2583_v62 }
  0xd3   : > { %vm863_vm9 = vmor %vm861_vm5, %vm862_vm6  ;;  %vm1037_vm5 = vcmask 15360   ;;  %vm1127_vm6 = vcmask 523264  }
  0xd4   : > { %v2585_v4 = vpop.eup %2584  ;;  %v710_v63 = vmul.f32 %v2581_v61, %v709_v2  ;;  %v858_v14 = vsub.f32 1.0, %v857_v7 }
  0xd5   : > { %v636_v9 = vadd.f32 1.0, %v2585_v4  ;;  %v2587_v12 = vpop.eup %2586 }
  0xd6   : > { %v711_v8 = vadd.f32 %v2581_v61, %v710_v63  ;;  %v722_v18 = vmul.f32 %v2587_v12, %v635_v60  ;;  %v859_v21 = vmul.f32 %v2583_v62, %v858_v14  ;;  %vm727_vm11 = vweird.f32 %v2587_v12 }
  0xd7   : > { %2588 = vrcp.f32 %v636_v9  ;;  %vm728_vm13 = vmor %vm726_vm12, %vm727_vm11  ;;  %v746_v40 = vand.u32 2147483648, %v636_v9  ;;  %v744_v46 = vand.u32 2147483647, %v636_v9  ;;  %vm740_vm1 = vweird.f32 %v636_v9 }
  0xd8   : > { %v715_v19 = vsel %vm714_vm7, %v2581_v61, %v711_v8  ;;  %v723_v24 = vsub.f32 1.0, %v722_v18  ;;  %v860_v27 = vadd.f32 %v2583_v62, %v859_v21 }
  0xd9   : > { %v720_v33 = vsel %vm717_vm8, %v719_v15, %v715_v19  ;;  %v747_v51 = vor.u32 1.1754944e-38, %v746_v40  ;;  %vm745_vm3 = vcmp.eq.f32.partialorder %v744_v46, 8.507059e+37 }
  0xda   : > { %v754_v17 = vmul.f32 %v720_v33, %v2969_v50  ;;  %v724_v28 = vmul.f32 %v2587_v12, %v723_v24  ;;  %v864_v30 = vsel %vm863_vm9, %v2583_v62, %v860_v27 }
  0xdb   : > { %v869_v35 = vsel %vm866_vm10, %v868_v25, %v864_v30 }
  0xdc   : > { %2352 = vmatmul.msk.f32.gmra.mxu2 %vm539_vm0, %v754_v17  ;;  %v725_v34 = vadd.f32 %v2587_v12, %v724_v28  ;;  %v873_v38 = vmul.f32 %v869_v35, %v2958_v42 }
  0xdd   : > { %v2589_v31 = vpop.eup %2588 }
  0xde   : > { %v736_v37 = vmul.f32 %v2589_v31, %v636_v9  ;;  %v729_v22 = vsel %vm728_vm13, %v2587_v12, %v725_v34  ;;  %2368 = vmatmul.msk.f32.gmra.mxu1 %vm539_vm0, %v873_v38  ;;  %vm741_vm15 = vweird.f32 %v2589_v31 }
  0xdf   : > { %v734_v50 = vsel %vm731_vm14, %v733_v36, %v729_v22  ;;  %vm742_vm2 = vmor %vm740_vm1, %vm741_vm15 }
  0xe0   : > { %v737_v39 = vsub.f32 1.0, %v736_v37  ;;  %v755_v32 = vmul.f32 %v734_v50, %v3011_v16  ;;  %v947_v16 = vld [vmem:[%s3507_s9 + $0x8] sm:$0xff] }
  0xe1   : > { %955 = vperm.xlu0 %2476, %v947_v16  }
  0xe2   : > { %v738_v45 = vmul.f32 %v2589_v31, %v737_v39 }
  0xe4   : > { %v739_v49 = vadd.f32 %v2589_v31, %v738_v45  ;;  %2353 = vmatmul.msk.f32.gmra.mxu2 %vm539_vm0, %v755_v32 }
  0xe6   : > { %v743_v52 = vsel %vm742_vm2, %v2589_v31, %v739_v49 }
  0xe7   : > { %v748_v42 = vsel %vm745_vm3, %v747_v51, %v743_v52 }
  0xe8   : > { %v756_v23 = vmul.f32 %v748_v42, %v3042_v48  ;;  %v944_v48 = vld [vmem:[%s3506_s8] sm:$0xff] }
  0xe9   : > { %950 = vperm.xlu0 %2476, %v946_v54  }
  0xea   : > { %2355 = vmatpush.xpose.msk.msra.mxu3 %vm539_vm0, %v756_v23 }
  0xec   : > { %2354 = vmatmul.msk.f32.gmra.mxu2 %vm539_vm0, %v756_v23 }
  0xee   : > { %2356 = vmatpush.xpose.msk.msra.mxu3 %vm539_vm0, %v755_v32 }
  0xf1   : > { %1269 = vrot.lane.b32.xlu0 %v3117_v59, %s2715_s19 }
  0xf2   : > { %2357 = vmatpush.xpose.msk.msra.mxu3 %vm539_vm0, %v754_v17 }
  0xf6   : > { %2358 = vmatpush.xpose.msk.msra.mxu3 %vm539_vm0, %v3055_v1 }
  0xfa   : > { %2359 = vmatpush.xpose.msk.msra.mxu3 %vm539_vm0, %v3039_v41 }
  0xfe   : > { %2360 = vmatpush.xpose.msk.msra.mxu3 %vm539_vm0, %v3004_v11  ;;  %v2539_v11 = vld [vmem:[%s3503_s5] ss:$0 sm:$0xff] }
 0x102   : > { %2361 = vmatpush.xpose.msk.msra.mxu3 %vm539_vm0, %v2961_v44 }
 0x106   : > { %2362 = vmatpush.xpose.msk.msra.mxu3 %vm539_vm0, %v2912_v6  ;;  %v3102_v6 = vld [vmem:[%s3099_s18] sm:$0xff]  ;;  %s2719_s18 = smov 4  }
 0x107   : > { %1265 = vrot.lane.b32.xlu1 %v3102_v6, %s2715_s19 }
 0x109   : > { %2363 = vmatmul.msk.f32.vlgmr.msra.gmra.mxu3 %vm539_vm0, %v944_v48 }
 0x111   : > { %2364 = vmatmul.msk.f32.gmra.mxu3 %vm539_vm0, %v945_v47 }
 0x12b   : > { %v1268_v37 = vpop.permute.xlu2 %1267 }
 0x132   : > { %v1021_v41 = vpop.f32.mrf.mxu1 }
 0x133   : > { %v3109_v13 = vadd.f32 %v2539_v11, %v1021_v41 }
 0x135   : > { %v920_v44 = vpop.f32.mrf.mxu2  ;;  %1313 = vrot.lane.b32.xlu1 %v3109_v13, %s2715_s19 }
 0x136   : > { %v921_v56 = vadd.f32 %v2538_v20, %v920_v44 }
 0x13d   : > { %v923_v55 = vpop.f32.mrf.mxu2 }
 0x13e   : > { %v924_v58 = vadd.f32 %v2538_v20, %v923_v55 }
 0x140   : > { %v3119_v60 = vpack.i.bf16 %v921_v56, %v924_v58  ;;  %v1024_v61 = vpop.f32.mrf.mxu1 }
 0x141   : > { %v3128_v43 = vadd.f32 %v2539_v11, %v1024_v61 }
 0x143   : > { %1315 = vrot.lane.b32.xlu2 %v3128_v43, %s2715_s19 }
 0x145   : > { %v926_v1 = vpop.f32.mrf.mxu2 }
 0x146   : > { %v927_v4 = vadd.f32 %v2538_v20, %v926_v1 }
 0x148   : > { %v1027_v2 = vpop.f32.mrf.mxu1 }
 0x149   : > { %v3130_v62 = vadd.f32 %v2539_v11, %v1027_v2 }
 0x14b   : > { %1317 = vrot.lane.b32.xlu1 %v3130_v62, %s2715_s19  ;;  %1271 = vrot.lane.b32.xlu2 %v3143_v57, %s2715_s19 }
 0x14d   : > { %v929_v3 = vpop.f32.mrf.mxu2 }
 0x14e   : > { %v930_v63 = vadd.f32 %v2538_v20, %v929_v3 }
 0x150   : > { %v3136_v5 = vpack.i.bf16 %v927_v4, %v930_v63 }
 0x153   : > { %v956_v25 = vpop.permute.xlu0 %955 }
 0x155   : > { %v932_v7 = vpop.f32.mrf.mxu2 }
 0x156   : > { %v933_v8 = vadd.f32 %v2538_v20, %v932_v7 }
 0x15b   : > { %v1030_v9 = vpop.f32.mrf.mxu1  ;;  %v951_v17 = vpop.permute.xlu0 %950 }
 0x15c   : > { %v3138_v10 = vadd.f32 %v2539_v11, %v1030_v9 }
 0x15e   : > { %1319 = vrot.lane.b32.xlu0 %v3138_v10, %s2715_s19 }
 0x15f   : > { %v935_v12 = vpop.f32.mrf.mxu2 }
 0x160   : > { %v936_v14 = vadd.f32 %v2538_v20, %v935_v12 }
 0x162   : > { %v3147_v15 = vpack.i.bf16 %v933_v8, %v936_v14 }
 0x163   : > { %v1270_v22 = vpop.permute.xlu0 %1269 }
 0x167   : > { %v938_v18 = vpop.f32.mrf.mxu2 }
 0x168   : > { %v939_v21 = vadd.f32 %v2538_v20, %v938_v18 }
 0x16f   : > { %v941_v19 = vpop.f32.mrf.mxu2 }
 0x170   : > { %v942_v33 = vadd.f32 %v2538_v20, %v941_v19 }
 0x172   : > { %1244 = vmatpush.msra.mxu1 %v942_v33  ;;  %v3149_v24 = vpack.i.bf16 %v939_v21, %v942_v33 }
 0x174   : > { %1245 = vmatpush.msra.mxu1 %v939_v21 }
 0x176   : > { %1246 = vmatpush.msra.mxu1 %v936_v14 }
 0x178   : > { %1247 = vmatpush.msra.mxu1 %v933_v8 }
 0x179   : > { %v1266_v36 = vpop.permute.xlu1 %1265 }
 0x17a   : > { %1248 = vmatpush.msra.mxu1 %v930_v63 }
 0x17c   : > { %1249 = vmatpush.msra.mxu1 %v927_v4 }
 0x17e   : > { %1250 = vmatpush.msra.mxu1 %v924_v58 }
 0x180   : > { %1251 = vmatpush.msra.mxu1 %v921_v56 }
 0x18c   : > { %v981_v26 = vpop.f32.mrf.mxu3 }
 0x18d   : > { %v3151_v27 = vadd.f32 %v981_v26, %v951_v17 }
 0x18f   : > { %2374 = vmatpush.msk.msrb.mxu0 %vm1050_vm4, %v3151_v27  ;;  %v1321_v34 = vrot.slane %v3151_v27, 2  ;;  %v1586_v35 = vrot.slane %v3151_v27, 4 }
 0x190   : > { %2375 = vmatmul.msk.f32.vlgmr.msrb.gmra.mxu0 %vm1037_vm5, %v3109_v13 }
 0x194   : > { %v984_v28 = vpop.f32.mrf.mxu3 }
 0x195   : > { %v3157_v29 = vadd.f32 %v984_v28, %v956_v25 }
 0x197   : > { %v1538_v30 = vrot.slane %v3157_v29, 4  ;;  %2369 = vmatpush.msk.msrb.mxu3 %vm1050_vm4, %v3157_v29  ;;  %v1273_v31 = vrot.slane %v3157_v29, 2 }
 0x198   : > { %2370 = vmatmul.msk.f32.vlgmr.msrb.gmra.mxu3 %vm1037_vm5, %v3102_v6  ;;  %2376 = vmatmul.msk.f32.gmra.mxu0 %vm1037_vm5, %v3128_v43 }
 0x199   : > { %2428 = vmatpush.msk.msra.mxu3 %vm1050_vm4, %v3151_v27  ;;  %2383 = vmatpush.msk.msrb.mxu2 %vm1050_vm4, %v1273_v31 }
 0x19a   : > { %2397 = vmatpush.msk.msrb.mxu1 %vm1050_vm4, %v1538_v30  ;;  %2384 = vmatmul.msk.f32.vlgmr.msrb.gmra.mxu2 %vm1037_vm5, %v1266_v36 }
 0x19b   : > { %2388 = vmatpush.msk.msrb.mxu3 %vm1050_vm4, %v1321_v34  ;;  %2402 = vmatpush.msk.msra.mxu2 %vm1050_vm4, %v1586_v35 }
 0x19d   : > { %v1316_v38 = vpop.permute.xlu2 %1315 }
 0x1a0   : > { %2371 = vmatmul.msk.f32.gmra.mxu3 %vm1037_vm5, %v3124_v0 }
 0x1a2   : > { %2385 = vmatmul.msk.f32.gmra.mxu2 %vm1037_vm5, %v1268_v37 }
 0x1a5   : > { %v1272_v50 = vpop.permute.xlu2 %1271 }
 0x1a7   : > { %v1314_v39 = vpop.permute.xlu1 %1313 }
 0x1a8   : > { %2372 = vmatmul.msk.f32.gmra.mxu3 %vm1037_vm5, %v3117_v59 }
 0x1aa   : > { %2386 = vmatmul.msk.f32.gmra.mxu2 %vm1037_vm5, %v1270_v22 }
 0x1b0   : > { %2373 = vmatmul.msk.f32.gmra.mxu3 %vm1037_vm5, %v3143_v57 }
 0x1b2   : > { %2387 = vmatmul.msk.f32.gmra.mxu2 %vm1037_vm5, %v1272_v50 }
 0x1b8   : > { %2377 = vmatmul.msk.f32.vlgmr.msra.gmra.mxu3 %vm1037_vm5, %v3130_v62 }
 0x1bd   : > { %v1318_v32 = vpop.permute.xlu1 %1317 }
 0x1c0   : > { %2378 = vmatmul.msk.f32.gmra.mxu3 %vm1037_vm5, %v3138_v10 }
 0x1c8   : > { %2389 = vmatmul.msk.f32.vlgmr.msrb.gmra.mxu3 %vm1037_vm5, %v1314_v39 }
 0x1d0   : > { %2390 = vmatmul.msk.f32.gmra.mxu3 %vm1037_vm5, %v1316_v38  ;;  %v1320_v40 = vpop.permute.xlu0 %1319 }
 0x1d8   : > { %2391 = vmatmul.msk.f32.gmra.mxu3 %vm1037_vm5, %v1318_v32 }
 0x1e0   : > { %2392 = vmatmul.msk.f32.gmra.mxu3 %vm1037_vm5, %v1320_v40 }
 0x20d   : > { %v1115_v45 = vpop.f32.mrf.mxu0 }
 0x215   : > { %v1118_v52 = vpop.f32.mrf.mxu0 }
 0x21b   : > { %v1071_v46 = vpop.f32.mrf.mxu3 }
 0x21c   : > { %v1116_v49 = vadd.f32 %v1115_v45, %v1071_v46 }
 0x21d   : > { %v1301_v41 = vpop.f32.mrf.mxu2 }
 0x21e   : > { %v1128_v51 = vsel %vm1127_vm6, %v1116_v49, -inf }
 0x21f   : > { %1129 = vmax.xlane.f32.xlu1 %v1128_v51 }
 0x223   : > { %v1074_v42 = vpop.f32.mrf.mxu3 }
 0x224   : > { %v1119_v53 = vadd.f32 %v1118_v52, %v1074_v42 }
 0x225   : > { %v1304_v61 = vpop.f32.mrf.mxu2 }
 0x226   : > { %v1131_v23 = vsel %vm1127_vm6, %v1119_v53, -inf }
 0x227   : > { %1132 = vmax.xlane.f32.xlu2 %v1131_v23 }
 0x22b   : > { %v1077_v16 = vpop.f32.mrf.mxu3 }
 0x22d   : > { %v1307_v63 = vpop.f32.mrf.mxu2 }
 0x233   : > { %v1080_v54 = vpop.f32.mrf.mxu3 }
 0x235   : > { %v1310_v8 = vpop.f32.mrf.mxu2 }
 0x23b   : > { %v1121_v48 = vpop.f32.mrf.mxu3 }
 0x23c   : > { %v1122_v47 = vadd.f32 %v1121_v48, %v1077_v16 }
 0x23e   : > { %v1134_v44 = vsel %vm1127_vm6, %v1122_v47, -inf }
 0x23f   : > { %1135 = vmax.xlane.f32.xlu0 %v1134_v44 }
 0x243   : > { %v1124_v11 = vpop.f32.mrf.mxu3 }
 0x244   : > { %v1125_v20 = vadd.f32 %v1124_v11, %v1080_v54 }
 0x246   : > { %v1137_v55 = vsel %vm1127_vm6, %v1125_v20, -inf }
 0x247   : > { %1138 = vmax.xlane.f32.xlu2 %v1137_v55 }
 0x24b   : > { %v1349_v56 = vpop.f32.mrf.mxu3 }
 0x24c   : > { %v3197_v58 = vadd.f32 %v1349_v56, %v1301_v41 }
 0x24e   : > { %v1361_v1 = vsel %vm1127_vm6, %v3197_v58, -inf }
 0x24f   : > { %1362 = vmax.xlane.f32.xlu1 %v1361_v1 }
 0x253   : > { %v1352_v2 = vpop.f32.mrf.mxu3 }
 0x254   : > { %v1353_v3 = vadd.f32 %v1352_v2, %v1304_v61 }
 0x256   : > { %v1364_v4 = vsel %vm1127_vm6, %v1353_v3, -inf }
 0x257   : > { %1365 = vmax.xlane.f32.xlu2 %v1364_v4 }
 0x25b   : > { %v1355_v7 = vpop.f32.mrf.mxu3 }
 0x25c   : > { %v1356_v9 = vadd.f32 %v1355_v7, %v1307_v63 }
 0x25e   : > { %v1367_v12 = vsel %vm1127_vm6, %v1356_v9, -inf }
 0x25f   : > { %1368 = vmax.xlane.f32.xlu0 %v1367_v12 }
 0x263   : > { %v1358_v14 = vpop.f32.mrf.mxu3 }
 0x264   : > { %v1359_v18 = vadd.f32 %v1358_v14, %v1310_v8 }
 0x266   : > { %v1370_v19 = vsel %vm1127_vm6, %v1359_v18, -inf }
 0x267   : > { %1371 = vmax.xlane.f32.xlu2 %v1370_v19 }
 0x292   : > { %v1130_v21 = vpop.xlane.xlu1 %1129 }
 0x293   : > { %v1140_v33 = vsub.f32 %v1116_v49, %v1130_v21 }
 0x295   : > { %v1144_v25 = vmul.f32 1.442695, %v1140_v33 }
 0x297   : > { %2590 = vpow2.f32 %v1144_v25 }
 0x29a   : > { %v1133_v17 = vpop.xlane.xlu2 %1132 }
 0x29b   : > { %v1141_v26 = vsub.f32 %v1119_v53, %v1133_v17 }
 0x29d   : > { %v3204_v28 = vpop.eup %2590  ;;  %v1146_v30 = vmul.f32 1.442695, %v1141_v26 }
 0x29e   : > { %v1152_v31 = vsel %vm1127_vm6, %v3204_v28, 0.0 }
 0x29f   : > { %2592 = vpow2.f32 %v1146_v30  ;;  %1153 = vadd.xlane.f32.xlu1 %v1152_v31 }
 0x2a5   : > { %v3208_v34 = vpop.eup %2592 }
 0x2a6   : > { %v1155_v35 = vsel %vm1127_vm6, %v3208_v34, 0.0 }
 0x2a7   : > { %1156 = vadd.xlane.f32.xlu0 %v1155_v35  ;;  %v1843_v35 = vrot.slane %v3151_v27, 6 }
 0x2b2   : > { %v1136_v36 = vpop.xlane.xlu0 %1135 }
 0x2b3   : > { %v1142_v37 = vsub.f32 %v1122_v47, %v1136_v36 }
 0x2b5   : > { %v1148_v38 = vmul.f32 1.442695, %v1142_v37 }
 0x2b7   : > { %2594 = vpow2.f32 %v1148_v38 }
 0x2ba   : > { %v1139_v22 = vpop.xlane.xlu2 %1138 }
 0x2bb   : > { %v1143_v50 = vsub.f32 %v1125_v20, %v1139_v22  ;;  %2483 = vrot.lane.b32.xlu0 %v3147_v15, %s2715_s19 }
 0x2bd   : > { %v3214_v39 = vpop.eup %2594  ;;  %v1150_v32 = vmul.f32 1.442695, %v1143_v50 }
 0x2be   : > { %v1158_v40 = vsel %vm1127_vm6, %v3214_v39, 0.0 }
 0x2bf   : > { %2596 = vpow2.f32 %v1150_v32  ;;  %1159 = vadd.xlane.f32.xlu1 %v1158_v40 }
 0x2c2   : > { %v1363_v23 = vpop.xlane.xlu1 %1362 }
 0x2c3   : > { %2493 = vrot.lane.b32.xlu0 %v3119_v60, %s2715_s19  ;;  %v1373_v54 = vsub.f32 %v3197_v58, %v1363_v23 }
 0x2c5   : > { %v3220_v45 = vpop.eup %2596  ;;  %v1377_v11 = vmul.f32 1.442695, %v1373_v54 }
 0x2c6   : > { %v1161_v46 = vsel %vm1127_vm6, %v3220_v45, 0.0 }
 0x2c7   : > { %1162 = vadd.xlane.f32.xlu2 %v1161_v46 }
 0x2ca   : > { %v1366_v52 = vpop.xlane.xlu2 %1365 }
 0x2cb   : > { %1530 = vrot.lane.b32.xlu0 %v3102_v6, %s2716_s25  ;;  %v1374_v53 = vsub.f32 %v1353_v3, %v1366_v52 }
 0x2cd   : > { %v1379_v16 = vmul.f32 1.442695, %v1374_v53 }
 0x2d2   : > { %v1369_v49 = vpop.xlane.xlu0 %1368 }
 0x2d3   : > { %1532 = vrot.lane.b32.xlu0 %v3124_v0, %s2716_s25  ;;  %v1375_v51 = vsub.f32 %v1356_v9, %v1369_v49 }
 0x2d5   : > { %v1381_v42 = vmul.f32 1.442695, %v1375_v51 }
 0x2d7   : > { %2598 = vpow2.f32 %v1381_v42 }
 0x2d8   : > { %2478 = vrot.lane.b32.xlu1 %v3149_v24, %s2715_s19  ;;  %2600 = vpow2.f32 %v1379_v16 }
 0x2d9   : > { %2602 = vpow2.f32 %v1377_v11 }
 0x2da   : > { %v1372_v48 = vpop.xlane.xlu2 %1371 }
 0x2db   : > { %1534 = vrot.lane.b32.xlu0 %v3117_v59, %s2716_s25  ;;  %v1376_v44 = vsub.f32 %v1359_v18, %v1372_v48 }
 0x2dd   : > { %v3237_v47 = vpop.eup %2598  ;;  %v1383_v20 = vmul.f32 1.442695, %v1376_v44 }
 0x2de   : > { %v1391_v41 = vsel %vm1127_vm6, %v3237_v47, 0.0  ;;  %v3241_v55 = vpop.eup %2600 }
 0x2df   : > { %2488 = vrot.lane.b32.xlu2 %v3136_v5, %s2715_s19  ;;  %2604 = vpow2.f32 %v1383_v20  ;;  %v1388_v56 = vsel %vm1127_vm6, %v3241_v55, 0.0  ;;  %v3245_v58 = vpop.eup %2602  ;;  %s2720_s19 = smov 6  }
 0x2e0   : > { %v1385_v1 = vsel %vm1127_vm6, %v3245_v58, 0.0 }
 0x2e3   : > { %1536 = vrot.lane.b32.xlu0 %v3143_v57, %s2716_s25 }
 0x2e5   : > { %v3247_v61 = vpop.eup %2604 }
 0x2e6   : > { %v1394_v2 = vsel %vm1127_vm6, %v3247_v61, 0.0 }
 0x302   : > { %1392 = vadd.xlane.f32.xlu1 %v1391_v41 }
 0x308   : > { %1389 = vadd.xlane.f32.xlu2 %v1388_v56 }
 0x30d   : > { %1386 = vadd.xlane.f32.xlu0 %v1385_v1 }
 0x310   : > { %1395 = vadd.xlane.f32.xlu2 %v1394_v2 }
 0x312   : > { %v1154_v3 = vpop.xlane.xlu1 %1153 }
 0x313   : > { %2606 = vrcp.f32 %v1154_v3  ;;  %v1175_v12 = vand.u32 2147483648, %v1154_v3  ;;  %v1173_v14 = vand.u32 2147483647, %v1154_v3  ;;  %vm1169_vm8 = vweird.f32 %v1154_v3 }
 0x315   : > { %v1176_v21 = vor.u32 1.1754944e-38, %v1175_v12  ;;  %vm1174_vm10 = vcmp.eq.f32.partialorder %v1173_v14, 8.507059e+37  ;;  %v1795_v14 = vrot.slane %v3157_v29, 6 }
 0x319   : > { %v2607_v4 = vpop.eup %2606 }
 0x31a   : > { %v1165_v63 = vmul.f32 %v2607_v4, %v1154_v3  ;;  %v1157_v7 = vpop.xlane.xlu0 %1156  ;;  %vm1170_vm7 = vweird.f32 %v2607_v4 }
 0x31b   : > { %2608 = vrcp.f32 %v1157_v7  ;;  %1578 = vrot.lane.b32.xlu1 %v3109_v13, %s2716_s25  ;;  %vm1171_vm9 = vmor %vm1169_vm8, %vm1170_vm7  ;;  %v1189_v31 = vand.u32 2147483648, %v1157_v7  ;;  %v1187_v37 = vand.u32 2147483647, %v1157_v7  ;;  %vm1183_vm12 = vweird.f32 %v1157_v7 }
 0x31c   : > { %v1166_v9 = vsub.f32 1.0, %v1165_v63 }
 0x31d   : > { %v1190_v38 = vor.u32 1.1754944e-38, %v1189_v31  ;;  %vm1188_vm14 = vcmp.eq.f32.partialorder %v1187_v37, 8.507059e+37 }
 0x31e   : > { %v1167_v8 = vmul.f32 %v2607_v4, %v1166_v9 }
 0x320   : > { %v1168_v18 = vadd.f32 %v2607_v4, %v1167_v8 }
 0x321   : > { %v2609_v19 = vpop.eup %2608  ;;  %1787 = vrot.lane.b32.xlu0 %v3102_v6, %s2717_s15 }
 0x322   : > { %v1172_v33 = vsel %vm1171_vm9, %v2607_v4, %v1168_v18  ;;  %v1179_v25 = vmul.f32 %v2609_v19, %v1157_v7  ;;  %vm1184_vm11 = vweird.f32 %v2609_v19 }
 0x323   : > { %v1177_v17 = vsel %vm1174_vm10, %v1176_v21, %v1172_v33  ;;  %1582 = vrot.lane.b32.xlu1 %v3130_v62, %s2716_s25  ;;  %vm1185_vm13 = vmor %vm1183_vm12, %vm1184_vm11 }
 0x324   : > { %v1180_v26 = vsub.f32 1.0, %v1179_v25  ;;  %v1220_v30 = vmul.f32 %v3204_v28, %v1177_v17 }
 0x326   : > { %v1181_v36 = vmul.f32 %v2609_v19, %v1180_v26  ;;  %2379 = vmatmul.msk.f32.vlgmr.msra.gmra.mxu1 %vm1127_vm6, %v1220_v30 }
 0x327   : > { %2416 = vmatpush.msk.msra.mxu1 %vm1050_vm4, %v1843_v35 }
 0x328   : > { %1580 = vrot.lane.b32.xlu2 %v3128_v43, %s2716_s25  ;;  %v1182_v6 = vadd.f32 %v2609_v19, %v1181_v36 }
 0x329   : > { %1835 = vrot.lane.b32.xlu0 %v3109_v13, %s2717_s15 }
 0x32a   : > { %v1186_v28 = vsel %vm1185_vm13, %v2609_v19, %v1182_v6 }
 0x32b   : > { %1839 = vrot.lane.b32.xlu1 %v3130_v62, %s2717_s15  ;;  %v1191_v27 = vsel %vm1188_vm14, %v1190_v38, %v1186_v28 }
 0x32c   : > { %v1221_v22 = vmul.f32 %v3208_v34, %v1191_v27 }
 0x32d   : > { %v2484_v32 = vpop.permute.xlu0 %2483 }
 0x32e   : > { %2380 = vmatmul.msk.f32.gmra.mxu1 %vm1127_vm6, %v1221_v22  ;;  %v2485_v3 = vunpack.i.l.bf16 %v2484_v32  ;;  %v2486_v7 = vunpack.i.h.bf16 %v2484_v32 }
 0x330   : > { %1584 = vrot.lane.b32.xlu2 %v3138_v10, %s2716_s25 }
 0x331   : > { %1789 = vrot.lane.b32.xlu0 %v3124_v0, %s2717_s15 }
 0x332   : > { %v1160_v50 = vpop.xlane.xlu1 %1159 }
 0x333   : > { %2610 = vrcp.f32 %v1160_v50  ;;  %1841 = vrot.lane.b32.xlu1 %v3138_v10, %s2717_s15  ;;  %v1203_v40 = vand.u32 2147483648, %v1160_v50  ;;  %v1201_v49 = vand.u32 2147483647, %v1160_v50  ;;  %vm1197_vm1 = vweird.f32 %v1160_v50 }
 0x335   : > { %v1204_v52 = vor.u32 1.1754944e-38, %v1203_v40  ;;  %vm1202_vm3 = vcmp.eq.f32.partialorder %v1201_v49, 8.507059e+37  ;;  %v2494_v54 = vpop.permute.xlu0 %2493 }
 0x336   : > { %v2496_v12 = vunpack.i.h.bf16 %v2494_v54 }
 0x338   : > { %2508 = vrot.lane.b32.xlu2 %v3147_v15, %s2716_s25 }
 0x339   : > { %v2611_v13 = vpop.eup %2610  ;;  %1837 = vrot.lane.b32.xlu0 %v3128_v43, %s2717_s15 }
 0x33a   : > { %v1193_v62 = vmul.f32 %v2611_v13, %v1160_v50  ;;  %v1163_v34 = vpop.xlane.xlu2 %1162  ;;  %vm1198_vm15 = vweird.f32 %v2611_v13 }
 0x33b   : > { %2612 = vrcp.f32 %v1163_v34  ;;  %2503 = vrot.lane.b32.xlu1 %v3149_v24, %s2717_s15  ;;  %vm1199_vm2 = vmor %vm1197_vm1, %vm1198_vm15  ;;  %v1217_v48 = vand.u32 2147483648, %v1163_v34  ;;  %v1215_v11 = vand.u32 2147483647, %v1163_v34  ;;  %vm1211_vm8 = vweird.f32 %v1163_v34 }
 0x33c   : > { %v1194_v0 = vsub.f32 1.0, %v1193_v62 }
 0x33d   : > { %v1218_v41 = vor.u32 1.1754944e-38, %v1217_v48  ;;  %vm1216_vm10 = vcmp.eq.f32.partialorder %v1215_v11, 8.507059e+37  ;;  %v1531_v4 = vpop.permute.xlu0 %1530 }
 0x33e   : > { %v1195_v46 = vmul.f32 %v2611_v13, %v1194_v0 }
 0x340   : > { %v1196_v10 = vadd.f32 %v2611_v13, %v1195_v46 }
 0x341   : > { %v2613_v51 = vpop.eup %2612  ;;  %1791 = vrot.lane.b32.xlu0 %v3117_v59, %s2717_s15 }
 0x342   : > { %v1207_v43 = vmul.f32 %v2613_v51, %v1163_v34  ;;  %v1200_v42 = vsel %vm1199_vm2, %v2611_v13, %v1196_v10  ;;  %vm1212_vm7 = vweird.f32 %v2613_v51  ;;  %v2489_v63 = vpop.permute.xlu2 %2488 }
 0x343   : > { %2513 = vrot.lane.b32.xlu1 %v3147_v15, %s2717_s15  ;;  %v1205_v53 = vsel %vm1202_vm3, %v1204_v52, %v1200_v42  ;;  %vm1213_vm9 = vmor %vm1211_vm8, %vm1212_vm7  ;;  %v2491_v9 = vunpack.i.h.bf16 %v2489_v63 }
 0x344   : > { %v1208_v23 = vsub.f32 1.0, %v1207_v43  ;;  %v1222_v16 = vmul.f32 %v3214_v39, %v1205_v53 }
 0x345   : > { %v1533_v8 = vpop.permute.xlu0 %1532 }
 0x346   : > { %v1209_v44 = vmul.f32 %v2613_v51, %v1208_v23  ;;  %2381 = vmatmul.msk.f32.gmra.mxu1 %vm1127_vm6, %v1222_v16 }
 0x348   : > { %v1210_v59 = vadd.f32 %v2613_v51, %v1209_v44 }
 0x349   : > { %1793 = vrot.lane.b32.xlu0 %v3143_v57, %s2717_s15  ;;  %v2490_v57 = vunpack.i.l.bf16 %v2489_v63 }
 0x34a   : > { %v2479_v20 = vpop.permute.xlu1 %2478  ;;  %v1214_v15 = vsel %vm1213_vm9, %v2613_v51, %v1210_v59 }
 0x34b   : > { %v2480_v56 = vunpack.i.l.bf16 %v2479_v20  ;;  %v1219_v1 = vsel %vm1216_vm10, %v1218_v41, %v1214_v15  ;;  %v2481_v2 = vunpack.i.h.bf16 %v2479_v20 }
 0x34c   : > { %v1223_v39 = vmul.f32 %v3220_v45, %v1219_v1  ;;  %v2495_v45 = vunpack.i.l.bf16 %v2494_v54 }
 0x34d   : > { %1509 = vmatpush.msra.mxu0 %v2480_v56  ;;  %v1535_v18 = vpop.permute.xlu0 %1534 }
 0x34e   : > { %2382 = vmatmul.msk.f32.gmra.mxu1 %vm1127_vm6, %v1223_v39 }
 0x34f   : > { %1510 = vmatpush.msra.mxu0 %v2481_v2 }
 0x351   : > { %1511 = vmatpush.msra.mxu0 %v2485_v3  ;;  %2498 = vrot.lane.b32.xlu0 %v3149_v24, %s2716_s25 }
 0x353   : > { %1512 = vmatpush.msra.mxu0 %v2486_v7 }
 0x355   : > { %1513 = vmatpush.msra.mxu0 %v2490_v57  ;;  %v1537_v24 = vpop.permute.xlu0 %1536 }
 0x356   : > { %2398 = vmatmul.msk.f32.vlgmr.msrb.gmra.mxu1 %vm1037_vm5, %v1531_v4 }
 0x357   : > { %1514 = vmatpush.msra.mxu0 %v2491_v9 }
 0x359   : > { %1515 = vmatpush.msra.mxu0 %v2495_v45 }
 0x35b   : > { %1516 = vmatpush.msra.mxu0 %v2496_v12 }
 0x35d   : > { %2411 = vmatpush.msk.msrb.mxu0 %vm1050_vm4, %v1795_v14 }
 0x35e   : > { %2399 = vmatmul.msk.f32.gmra.mxu1 %vm1037_vm5, %v1533_v8 }
 0x366   : > { %2400 = vmatmul.msk.f32.gmra.mxu1 %vm1037_vm5, %v1535_v18 }
 0x36e   : > { %2401 = vmatmul.msk.f32.gmra.mxu1 %vm1037_vm5, %v1537_v24 }
 0x375   : > { %v3301_v21 = vpop.xlane.xlu1 %1392 }
 0x376   : > { %vm1430_vm7 = vweird.f32 %v3301_v21  ;;  %v1434_v59 = vand.u32 2147483647, %v3301_v21 }
 0x378   : > { %vm1435_vm9 = vcmp.eq.f32.partialorder %v1434_v59, 8.507059e+37 }
 0x37b   : > { %v1390_v19 = vpop.xlane.xlu2 %1389 }
 0x37c   : > { %2614 = vrcp.f32 %v1390_v19  ;;  %v1422_v40 = vand.u32 2147483648, %v1390_v19  ;;  %vm1416_vm15 = vweird.f32 %v1390_v19  ;;  %v1420_v10 = vand.u32 2147483647, %v1390_v19 }
 0x37e   : > { %v1423_v53 = vor.u32 1.1754944e-38, %v1422_v40  ;;  %vm1421_vm2 = vcmp.eq.f32.partialorder %v1420_v10, 8.507059e+37 }
 0x380   : > { %v1387_v33 = vpop.xlane.xlu0 %1386 }
 0x381   : > { %2616 = vrcp.f32 %v1387_v33  ;;  %v1408_v6 = vand.u32 2147483648, %v1387_v33  ;;  %v1406_v27 = vand.u32 2147483647, %v1387_v33  ;;  %vm1402_vm11 = vweird.f32 %v1387_v33 }
 0x382   : > { %v2615_v25 = vpop.eup %2614  ;;  %2618 = vrcp.f32 %v3301_v21 }
 0x383   : > { %v1412_v29 = vmul.f32 %v2615_v25, %v1390_v19  ;;  %v3304_v35 = vpop.xlane.xlu2 %1395  ;;  %v1409_v62 = vor.u32 1.1754944e-38, %v1408_v6  ;;  %vm1407_vm13 = vcmp.eq.f32.partialorder %v1406_v27, 8.507059e+37  ;;  %vm1417_vm14 = vweird.f32 %v2615_v25 }
 0x384   : > { %2620 = vrcp.f32 %v3304_v35  ;;  %vm1418_vm1 = vmor %vm1416_vm15, %vm1417_vm14  ;;  %v1448_v4 = vand.u32 2147483647, %v3304_v35 }
 0x385   : > { %v1413_v30 = vsub.f32 1.0, %v1412_v29 }
 0x387   : > { %v2617_v17 = vpop.eup %2616  ;;  %v1414_v38 = vmul.f32 %v2615_v25, %v1413_v30 }
 0x388   : > { %v2619_v26 = vpop.eup %2618  ;;  %v1398_v31 = vmul.f32 %v2617_v17, %v1387_v33  ;;  %vm1403_vm4 = vweird.f32 %v2617_v17 }
 0x389   : > { %v1426_v37 = vmul.f32 %v2619_v26, %v3301_v21  ;;  %vm1404_vm12 = vmor %vm1402_vm11, %vm1403_vm4  ;;  %v1415_v32 = vadd.f32 %v2615_v25, %v1414_v38  ;;  %vm1431_vm3 = vweird.f32 %v2619_v26  ;;  %vm1444_vm4 = vweird.f32 %v3304_v35 }
 0x38a   : > { %v1399_v36 = vsub.f32 1.0, %v1398_v31  ;;  %v2621_v0 = vpop.eup %2620  ;;  %vm1432_vm8 = vmor %vm1430_vm7, %vm1431_vm3 }
 0x38b   : > { %v1427_v13 = vsub.f32 1.0, %v1426_v37  ;;  %v1440_v43 = vmul.f32 %v2621_v0, %v3304_v35  ;;  %v1419_v42 = vsel %vm1418_vm1, %v2615_v25, %v1415_v32  ;;  %v1581_v23 = vpop.permute.xlu2 %1580  ;;  %vm1445_vm10 = vweird.f32 %v2621_v0 }
 0x38c   : > { %v1400_v28 = vmul.f32 %v2617_v17, %v1399_v36  ;;  %v1424_v54 = vsel %vm1421_vm2, %v1423_v53, %v1419_v42  ;;  %vm1446_vm11 = vmor %vm1444_vm4, %vm1445_vm10 }
 0x38d   : > { %v1579_v22 = vpop.permute.xlu1 %1578  ;;  %v1428_v52 = vmul.f32 %v2619_v26, %v1427_v13  ;;  %v1441_v48 = vsub.f32 1.0, %v1440_v43  ;;  %v1454_v11 = vmul.f32 %v3241_v55, %v1424_v54  ;;  %v1450_v55 = vand.u32 2147483648, %v3304_v35 }
 0x38e   : > { %v1401_v50 = vadd.f32 %v2617_v17, %v1400_v28  ;;  %2403 = vmatmul.msk.f32.vlgmr.msra.gmra.mxu2 %vm1037_vm5, %v1579_v22 }
 0x38f   : > { %v1429_v44 = vadd.f32 %v2619_v26, %v1428_v52  ;;  %v1442_v20 = vmul.f32 %v2621_v0, %v1441_v48  ;;  %v1451_v57 = vor.u32 1.1754944e-38, %v1450_v55 }
 0x390   : > { %v1405_v34 = vsel %vm1404_vm12, %v2617_v17, %v1401_v50  ;;  %vm1449_vm12 = vcmp.eq.f32.partialorder %v1448_v4, 8.507059e+37 }
 0x391   : > { %v1410_v46 = vsel %vm1407_vm13, %v1409_v62, %v1405_v34  ;;  %v1433_v15 = vsel %vm1432_vm8, %v2619_v26, %v1429_v44  ;;  %v1443_v2 = vadd.f32 %v2621_v0, %v1442_v20 }
 0x392   : > { %v1453_v49 = vmul.f32 %v3245_v58, %v1410_v46  ;;  %v1436_v58 = vand.u32 2147483648, %v3301_v21 }
 0x393   : > { %v1788_v51 = vpop.permute.xlu0 %1787  ;;  %v1447_v7 = vsel %vm1446_vm11, %v2621_v0, %v1443_v2  ;;  %v1585_v9 = vpop.permute.xlu2 %1584 }
 0x394   : > { %2393 = vmatmul.msk.f32.vlgmr.msra.gmra.mxu0 %vm1127_vm6, %v1453_v49  ;;  %v1437_v56 = vor.u32 1.1754944e-38, %v1436_v58  ;;  %v1452_v12 = vsel %vm1449_vm12, %v1451_v57, %v1447_v7 }
 0x395   : > { %v1583_v16 = vpop.permute.xlu1 %1582  ;;  %v1456_v8 = vmul.f32 %v3247_v61, %v1452_v12 }
 0x396   : > { %2404 = vmatmul.msk.f32.gmra.mxu2 %vm1037_vm5, %v1581_v23  ;;  %v1438_v39 = vsel %vm1435_vm9, %v1437_v56, %v1433_v15 }
 0x397   : > { %v1455_v3 = vmul.f32 %v3237_v47, %v1438_v39 }
 0x39b   : > { %v1836_v41 = vpop.permute.xlu0 %1835  ;;  %v2509_v26 = vpop.permute.xlu2 %2508 }
 0x39c   : > { %2394 = vmatmul.msk.f32.gmra.mxu0 %vm1127_vm6, %v1454_v11  ;;  %2417 = vmatmul.msk.f32.vlgmr.msra.gmra.mxu1 %vm1037_vm5, %v1836_v41  ;;  %v2510_v31 = vunpack.i.l.bf16 %v2509_v26  ;;  %v2511_v35 = vunpack.i.h.bf16 %v2509_v26 }
 0x39d   : > { %v1840_v1 = vpop.permute.xlu1 %1839 }
 0x39e   : > { %2405 = vmatmul.msk.f32.gmra.mxu2 %vm1037_vm5, %v1583_v16 }
 0x3a3   : > { %v1790_v63 = vpop.permute.xlu0 %1789  ;;  %v3335_v36 = vpop.f32.mrf.mxu1 }
 0x3a4   : > { %2395 = vmatmul.msk.f32.gmra.mxu0 %vm1127_vm6, %v1455_v3 }
 0x3a5   : > { %v1842_v45 = vpop.permute.xlu1 %1841 }
 0x3a6   : > { %2406 = vmatmul.msk.f32.gmra.mxu2 %vm1037_vm5, %v1585_v9 }
 0x3ab   : > { %v1838_v14 = vpop.permute.xlu0 %1837  ;;  %v3337_v37 = vpop.f32.mrf.mxu1 }
 0x3ac   : > { %2396 = vmatmul.msk.f32.gmra.mxu0 %vm1127_vm6, %v1456_v8  ;;  %2418 = vmatmul.msk.f32.gmra.mxu1 %vm1037_vm5, %v1838_v14 }
 0x3ad   : > { %v2504_v47 = vpop.permute.xlu1 %2503 }
 0x3ae   : > { %v2505_v18 = vunpack.i.l.bf16 %v2504_v47  ;;  %v2506_v24 = vunpack.i.h.bf16 %v2504_v47 }
 0x3b0   : > { %2023 = vmatpush.msrb.mxu2 %v2505_v18 }
 0x3b2   : > { %2024 = vmatpush.msrb.mxu2 %v2506_v24 }
 0x3b3   : > { %v1792_v19 = vpop.permute.xlu0 %1791 }
 0x3b4   : > { %2412 = vmatmul.msk.f32.vlgmr.msrb.gmra.mxu0 %vm1037_vm5, %v1788_v51  ;;  %2419 = vmatmul.msk.f32.gmra.mxu1 %vm1037_vm5, %v1840_v1 }
 0x3b5   : > { %v2514_v21 = vpop.permute.xlu1 %2513 }
 0x3b6   : > { %v2515_v33 = vunpack.i.l.bf16 %v2514_v21  ;;  %v2516_v25 = vunpack.i.h.bf16 %v2514_v21 }
 0x3b8   : > { %2025 = vmatpush.msrb.mxu2 %v2515_v33 }
 0x3ba   : > { %2026 = vmatpush.msrb.mxu2 %v2516_v25 }
 0x3bb   : > { %v1794_v61 = vpop.permute.xlu0 %1793 }
 0x3bc   : > { %2413 = vmatmul.msk.f32.gmra.mxu0 %vm1037_vm5, %v1790_v63  ;;  %2420 = vmatmul.msk.f32.gmra.mxu1 %vm1037_vm5, %v1842_v45 }
 0x3c3   : > { %v2499_v29 = vpop.permute.xlu0 %2498  ;;  %v3339_v6 = vpop.f32.mrf.mxu1 }
 0x3c4   : > { %v2500_v17 = vunpack.i.l.bf16 %v2499_v29  ;;  %2414 = vmatmul.msk.f32.gmra.mxu0 %vm1037_vm5, %v1792_v19  ;;  %v2501_v30 = vunpack.i.h.bf16 %v2499_v29 }
 0x3c6   : > { %1766 = vmatpush.msra.mxu3 %v2500_v17 }
 0x3c8   : > { %1767 = vmatpush.msra.mxu3 %v2501_v30 }
 0x3ca   : > { %1768 = vmatpush.msra.mxu3 %v2510_v31 }
 0x3cb   : > { %v3341_v38 = vpop.f32.mrf.mxu1 }
 0x3cc   : > { %1769 = vmatpush.msra.mxu3 %v2511_v35  ;;  %2415 = vmatmul.msk.f32.gmra.mxu0 %vm1037_vm5, %v1794_v61 }
 0x3d3   : > { %v1566_v28 = vpop.f32.mrf.mxu1 }
 0x3db   : > { %v1569_v27 = vpop.f32.mrf.mxu1 }
 0x3e3   : > { %v1572_v40 = vpop.f32.mrf.mxu1 }
 0x3eb   : > { %v1575_v43 = vpop.f32.mrf.mxu1 }
 0x411   : > { %v3343_v22 = vpop.f32.mrf.mxu0  ;;  %v1614_v50 = vpop.f32.mrf.mxu2 }
 0x412   : > { %v1615_v13 = vadd.f32 %v1614_v50, %v1566_v28 }
 0x414   : > { %v1626_v62 = vsel %vm1127_vm6, %v1615_v13, -inf }
 0x415   : > { %1627 = vmax.xlane.f32.xlu2 %v1626_v62 }
 0x419   : > { %v3346_v34 = vpop.f32.mrf.mxu0  ;;  %v1617_v32 = vpop.f32.mrf.mxu2 }
 0x41a   : > { %v1618_v0 = vadd.f32 %v1617_v32, %v1569_v27  ;;  %v1871_v54 = vpop.f32.mrf.mxu1 }
 0x41c   : > { %v1629_v46 = vsel %vm1127_vm6, %v1618_v0, -inf }
 0x41d   : > { %1630 = vmax.xlane.f32.xlu1 %v1629_v46 }
 0x421   : > { %v3349_v49 = vpop.f32.mrf.mxu0  ;;  %v1620_v10 = vpop.f32.mrf.mxu2 }
 0x422   : > { %v3351_v51 = vadd.f32 %v1620_v10, %v1572_v40 }
 0x424   : > { %v1632_v52 = vsel %vm1127_vm6, %v3351_v51, -inf }
 0x425   : > { %1633 = vmax.xlane.f32.xlu0 %v1632_v52 }
 0x429   : > { %v3355_v42 = vpop.f32.mrf.mxu0  ;;  %v1623_v53 = vpop.f32.mrf.mxu2 }
 0x42a   : > { %v3357_v23 = vadd.f32 %v1623_v53, %v1575_v43  ;;  %v1874_v11 = vpop.f32.mrf.mxu1 }
 0x42c   : > { %v1635_v16 = vsel %vm1127_vm6, %v3357_v23, -inf }
 0x42d   : > { %1636 = vmax.xlane.f32.xlu2 %v1635_v16 }
 0x431   : > { %v1823_v48 = vpop.f32.mrf.mxu0 }
 0x432   : > { %v1872_v44 = vadd.f32 %v1871_v54, %v1823_v48  ;;  %v1877_v15 = vpop.f32.mrf.mxu1 }
 0x434   : > { %v1883_v58 = vsel %vm1127_vm6, %v1872_v44, -inf }
 0x435   : > { %1884 = vmax.xlane.f32.xlu0 %v1883_v58 }
 0x439   : > { %v1826_v59 = vpop.f32.mrf.mxu0 }
 0x43a   : > { %v1875_v41 = vadd.f32 %v1874_v11, %v1826_v59  ;;  %v1880_v2 = vpop.f32.mrf.mxu1 }
 0x43c   : > { %v1886_v20 = vsel %vm1127_vm6, %v1875_v41, -inf }
 0x43d   : > { %1887 = vmax.xlane.f32.xlu2 %v1886_v20 }
 0x441   : > { %v1829_v56 = vpop.f32.mrf.mxu0 }
 0x442   : > { %v1878_v1 = vadd.f32 %v1877_v15, %v1829_v56 }
 0x444   : > { %v1889_v39 = vsel %vm1127_vm6, %v1878_v1, -inf }
 0x445   : > { %1890 = vmax.xlane.f32.xlu1 %v1889_v39 }
 0x449   : > { %v1832_v55 = vpop.f32.mrf.mxu0 }
 0x44a   : > { %v1881_v3 = vadd.f32 %v1880_v2, %v1832_v55 }
 0x44c   : > { %v1892_v4 = vsel %vm1127_vm6, %v1881_v3, -inf }
 0x44d   : > { %1893 = vmax.xlane.f32.xlu0 %v1892_v4 }
 0x455   : > { %2523 = vrot.lane.b32.xlu2 %v3136_v5, %s2717_s15 }
 0x488   : > { %v1628_v63 = vpop.xlane.xlu2 %1627 }
 0x489   : > { %v1638_v7 = vsub.f32 %v1615_v13, %v1628_v63 }
 0x48b   : > { %v1642_v57 = vmul.f32 1.442695, %v1638_v7 }
 0x48d   : > { %2622 = vpow2.f32 %v1642_v57 }
 0x490   : > { %v1631_v9 = vpop.xlane.xlu1 %1630 }
 0x491   : > { %v1639_v45 = vsub.f32 %v1618_v0, %v1631_v9 }
 0x493   : > { %v3367_v12 = vpop.eup %2622  ;;  %v1644_v8 = vmul.f32 1.442695, %v1639_v45 }
 0x494   : > { %v1650_v14 = vsel %vm1127_vm6, %v3367_v12, 0.0 }
 0x495   : > { %2624 = vpow2.f32 %v1644_v8  ;;  %1651 = vadd.xlane.f32.xlu1 %v1650_v14 }
 0x498   : > { %v1634_v24 = vpop.xlane.xlu0 %1633 }
 0x49b   : > { %v3371_v47 = vpop.eup %2624 }
 0x49c   : > { %v1653_v18 = vsel %vm1127_vm6, %v3371_v47, 0.0 }
 0x49d   : > { %1654 = vadd.xlane.f32.xlu2 %v1653_v18 }
 0x4a0   : > { %v1637_v19 = vpop.xlane.xlu2 %1636 }
 0x4a1   : > { %v1641_v16 = vsub.f32 %v3357_v23, %v1637_v19 }
 0x4a8   : > { %v1885_v21 = vpop.xlane.xlu0 %1884 }
 0x4a9   : > { %v1895_v33 = vsub.f32 %v1872_v44, %v1885_v21 }
 0x4ab   : > { %v1899_v25 = vmul.f32 1.442695, %v1895_v33 }
 0x4ad   : > { %2626 = vpow2.f32 %v1899_v25 }
 0x4ae   : > { %2518 = vrot.lane.b32.xlu1 %v3136_v5, %s2716_s25  ;;  %v1640_v5 = vsub.f32 %v3351_v51, %v1634_v24 }
 0x4b0   : > { %v1888_v61 = vpop.xlane.xlu2 %1887  ;;  %v1646_v13 = vmul.f32 1.442695, %v1640_v5 }
 0x4b1   : > { %v1896_v29 = vsub.f32 %v1875_v41, %v1888_v61 }
 0x4b3   : > { %v3377_v17 = vpop.eup %2626  ;;  %v1901_v26 = vmul.f32 1.442695, %v1896_v29 }
 0x4b4   : > { %v1907_v30 = vsel %vm1127_vm6, %v3377_v17, 0.0 }
 0x4b5   : > { %2628 = vpow2.f32 %v1901_v26  ;;  %1908 = vadd.xlane.f32.xlu2 %v1907_v30 }
 0x4b6   : > { %2630 = vpow2.f32 %v1646_v13 }
 0x4b8   : > { %v2524_v31 = vpop.permute.xlu2 %2523  ;;  %v1891_v52 = vpop.xlane.xlu1 %1890 }
 0x4b9   : > { %v2525_v35 = vunpack.i.l.bf16 %v2524_v31  ;;  %v2526_v27 = vunpack.i.h.bf16 %v2524_v31  ;;  %v1897_v43 = vsub.f32 %v1878_v1, %v1891_v52 }
 0x4bb   : > { %v3381_v28 = vpop.eup %2628  ;;  %2027 = vmatpush.msrb.mxu2 %v2525_v35  ;;  %v1903_v53 = vmul.f32 1.442695, %v1897_v43 }
 0x4bc   : > { %v1910_v50 = vsel %vm1127_vm6, %v3381_v28, 0.0  ;;  %v3390_v40 = vpop.eup %2630 }
 0x4bd   : > { %1911 = vadd.xlane.f32.xlu0 %v1910_v50  ;;  %2028 = vmatpush.msrb.mxu2 %v2526_v27  ;;  %v1656_v46 = vsel %vm1127_vm6, %v3390_v40, 0.0 }
 0x4c0   : > { %v1894_v62 = vpop.xlane.xlu0 %1893 }
 0x4c1   : > { %v1898_v32 = vsub.f32 %v1881_v3, %v1894_v62 }
 0x4c3   : > { %v1905_v0 = vmul.f32 1.442695, %v1898_v32 }
 0x4c5   : > { %2632 = vpow2.f32 %v1905_v0 }
 0x4c6   : > { %2634 = vpow2.f32 %v1903_v53 }
 0x4cb   : > { %v3394_v10 = vpop.eup %2632 }
 0x4cc   : > { %v1916_v51 = vsel %vm1127_vm6, %v3394_v10, 0.0  ;;  %v3399_v54 = vpop.eup %2634 }
 0x4cd   : > { %2528 = vrot.lane.b32.xlu2 %v3119_v60, %s2716_s25  ;;  %v1913_v48 = vsel %vm1127_vm6, %v3399_v54, 0.0 }
 0x4d1   : > { %2533 = vrot.lane.b32.xlu0 %v3119_v60, %s2717_s15  ;;  %v1648_v60 = vmul.f32 1.442695, %v1641_v16 }
 0x4d3   : > { %2636 = vpow2.f32 %v1648_v60 }
 0x4d8   : > { %1657 = vadd.xlane.f32.xlu1 %v1656_v46 }
 0x4d9   : > { %v3403_v44 = vpop.eup %2636 }
 0x4da   : > { %v1659_v58 = vsel %vm1127_vm6, %v3403_v44, 0.0 }
 0x4e0   : > { %1917 = vadd.xlane.f32.xlu1 %v1916_v51 }
 0x4f6   : > { %1914 = vadd.xlane.f32.xlu2 %v1913_v48 }
 0x4f9   : > { %2048 = vrot.lane.b32.xlu1 %v3343_v22, %s2718_s26 }
 0x4fb   : > { %1660 = vadd.xlane.f32.xlu0 %v1659_v58 }
 0x501   : > { %2052 = vrot.lane.b32.xlu1 %v3349_v49, %s2718_s26 }
 0x508   : > { %v1652_v23 = vpop.xlane.xlu1 %1651 }
 0x509   : > { %2638 = vrcp.f32 %v1652_v23  ;;  %v1673_v3 = vand.u32 2147483648, %v1652_v23  ;;  %vm1667_vm14 = vweird.f32 %v1652_v23 }
 0x50b   : > { %v1674_v57 = vor.u32 1.1754944e-38, %v1673_v3 }
 0x50e   : > { %2050 = vrot.lane.b32.xlu2 %v3346_v34, %s2718_s26 }
 0x50f   : > { %v2639_v59 = vpop.eup %2638 }
 0x510   : > { %v1655_v11 = vpop.xlane.xlu2 %1654  ;;  %v1663_v41 = vmul.f32 %v2639_v59, %v1652_v23  ;;  %vm1668_vm13 = vweird.f32 %v2639_v59 }
 0x511   : > { %2640 = vrcp.f32 %v1655_v11  ;;  %vm1669_vm15 = vmor %vm1667_vm14, %vm1668_vm13  ;;  %v1687_v19 = vand.u32 2147483648, %v1655_v11  ;;  %vm1681_vm3 = vweird.f32 %v1655_v11  ;;  %v1685_v61 = vand.u32 2147483647, %v1655_v11 }
 0x512   : > { %v1664_v56 = vsub.f32 1.0, %v1663_v41 }
 0x513   : > { %v1688_v30 = vor.u32 1.1754944e-38, %v1687_v19  ;;  %vm1686_vm8 = vcmp.eq.f32.partialorder %v1685_v61, 8.507059e+37 }
 0x514   : > { %v1665_v39 = vmul.f32 %v2639_v59, %v1664_v56 }
 0x516   : > { %2054 = vrot.lane.b32.xlu2 %v3355_v42, %s2718_s26  ;;  %v1666_v34 = vadd.f32 %v2639_v59, %v1665_v39  ;;  %v1671_v42 = vand.u32 2147483647, %v1652_v23  ;;  %s3456_s26 = scalar_lea.vmem %s3511_s13, %s2329_s24 }
 0x517   : > { %v2641_v1 = vpop.eup %2640 }
 0x518   : > { %v1677_v2 = vmul.f32 %v2641_v1, %v1655_v11  ;;  %v1670_v63 = vsel %vm1669_vm15, %v2639_v59, %v1666_v34  ;;  %vm1672_vm1 = vcmp.eq.f32.partialorder %v1671_v42, 8.507059e+37  ;;  %vm1682_vm2 = vweird.f32 %v2641_v1 }
 0x519   : > { %v1675_v14 = vsel %vm1672_vm1, %v1674_v57, %v1670_v63  ;;  %vm1683_vm7 = vmor %vm1681_vm3, %vm1682_vm2 }
 0x51a   : > { %v1678_v55 = vsub.f32 1.0, %v1677_v2  ;;  %v1718_v25 = vmul.f32 %v3367_v12, %v1675_v14 }
 0x51c   : > { %v1679_v7 = vmul.f32 %v2641_v1, %v1678_v55 }
 0x51e   : > { %v1680_v24 = vadd.f32 %v2641_v1, %v1679_v7 }
 0x520   : > { %v2519_v20 = vpop.permute.xlu1 %2518  ;;  %v1684_v26 = vsel %vm1683_vm7, %v2641_v1, %v1680_v24 }
 0x521   : > { %v2520_v15 = vunpack.i.l.bf16 %v2519_v20  ;;  %v2521_v22 = vunpack.i.h.bf16 %v2519_v20  ;;  %v1689_v27 = vsel %vm1686_vm8, %v1688_v30, %v1684_v26 }
 0x522   : > { %v1719_v13 = vmul.f32 %v3371_v47, %v1689_v27 }
 0x523   : > { %1770 = vmatpush.msra.mxu3 %v2520_v15 }
 0x525   : > { %1771 = vmatpush.msra.mxu3 %v2521_v22 }
 0x528   : > { %v1909_v49 = vpop.xlane.xlu2 %1908 }
 0x529   : > { %2642 = vrcp.f32 %v1909_v49  ;;  %v1930_v62 = vand.u32 2147483648, %v1909_v49  ;;  %vm1924_vm10 = vweird.f32 %v1909_v49  ;;  %v1928_v12 = vand.u32 2147483647, %v1909_v49 }
 0x52b   : > { %v1931_v46 = vor.u32 1.1754944e-38, %v1930_v62  ;;  %vm1929_vm11 = vcmp.eq.f32.partialorder %v1928_v12, 8.507059e+37 }
 0x52f   : > { %v2643_v4 = vpop.eup %2642 }
 0x530   : > { %v1912_v9 = vpop.xlane.xlu0 %1911  ;;  %v2529_v45 = vpop.permute.xlu2 %2528  ;;  %v1920_v8 = vmul.f32 %v2643_v4, %v1909_v49  ;;  %vm1925_vm9 = vweird.f32 %v2643_v4 }
 0x531   : > { %2644 = vrcp.f32 %v1912_v9  ;;  %v2530_v18 = vunpack.i.l.bf16 %v2529_v45  ;;  %v2531_v21 = vunpack.i.h.bf16 %v2529_v45  ;;  %vm1926_vm4 = vmor %vm1924_vm10, %vm1925_vm9  ;;  %v1944_v16 = vand.u32 2147483648, %v1912_v9 }
 0x532   : > { %v1921_v33 = vsub.f32 1.0, %v1920_v8  ;;  %vm1938_vm13 = vweird.f32 %v1912_v9  ;;  %v1942_v48 = vand.u32 2147483647, %v1912_v9 }
 0x533   : > { %1772 = vmatpush.msra.mxu3 %v2530_v18  ;;  %v1945_v23 = vor.u32 1.1754944e-38, %v1944_v16 }
 0x534   : > { %v1922_v31 = vmul.f32 %v2643_v4, %v1921_v33  ;;  %vm1943_vm15 = vcmp.eq.f32.partialorder %v1942_v48, 8.507059e+37 }
 0x535   : > { %1773 = vmatpush.msra.mxu3 %v2531_v21 }
 0x536   : > { %2407 = vmatmul.msk.f32.vlgmr.msra.gmra.mxu3 %vm1127_vm6, %v1718_v25  ;;  %v1923_v50 = vadd.f32 %v2643_v4, %v1922_v31 }
 0x537   : > { %v2645_v29 = vpop.eup %2644 }
 0x538   : > { %v1934_v35 = vmul.f32 %v2645_v29, %v1912_v9  ;;  %v1927_v32 = vsel %vm1926_vm4, %v2643_v4, %v1923_v50  ;;  %vm1939_vm12 = vweird.f32 %v2645_v29 }
 0x539   : > { %v1932_v52 = vsel %vm1929_vm11, %v1931_v46, %v1927_v32  ;;  %vm1940_vm14 = vmor %vm1938_vm13, %vm1939_vm12 }
 0x53a   : > { %v1935_v5 = vsub.f32 1.0, %v1934_v35  ;;  %v1975_v47 = vmul.f32 %v3377_v17, %v1932_v52 }
 0x53c   : > { %v1936_v0 = vmul.f32 %v2645_v29, %v1935_v5 }
 0x53e   : > { %2408 = vmatmul.msk.f32.gmra.mxu3 %vm1127_vm6, %v1719_v13  ;;  %v1937_v53 = vadd.f32 %v2645_v29, %v1936_v0 }
 0x540   : > { %v1941_v58 = vsel %vm1940_vm14, %v2645_v29, %v1937_v53 }
 0x541   : > { %v1946_v59 = vsel %vm1943_vm15, %v1945_v23, %v1941_v58 }
 0x542   : > { %v1976_v41 = vmul.f32 %v3381_v28, %v1946_v59 }
 0x543   : > { %v2534_v51 = vpop.permute.xlu0 %2533 }
 0x544   : > { %v2535_v43 = vunpack.i.l.bf16 %v2534_v51  ;;  %v2536_v60 = vunpack.i.h.bf16 %v2534_v51 }
 0x546   : > { %2029 = vmatpush.msrb.mxu2 %v2535_v43 }
 0x548   : > { %2030 = vmatpush.msrb.mxu2 %v2536_v60 }
 0x549   : > { %2421 = vmatmul.msk.f32.vlgmr.msrb.gmra.mxu2 %vm1127_vm6, %v1975_v47 }
 0x54b   : > { %v1658_v11 = vpop.xlane.xlu1 %1657 }
 0x54c   : > { %2646 = vrcp.f32 %v1658_v11  ;;  %v1701_v22 = vand.u32 2147483648, %v1658_v11  ;;  %v1699_v1 = vand.u32 2147483647, %v1658_v11  ;;  %vm1695_vm2 = vweird.f32 %v1658_v11 }
 0x54e   : > { %v1702_v2 = vor.u32 1.1754944e-38, %v1701_v22  ;;  %vm1700_vm7 = vcmp.eq.f32.partialorder %v1699_v1, 8.507059e+37  ;;  %v3440_v22 = vld [vmem:[%s3510_s12] ss:$0 sm:$0xff] }
 0x551   : > { %2422 = vmatmul.msk.f32.gmra.mxu2 %vm1127_vm6, %v1976_v41 }
 0x552   : > { %v2647_v20 = vpop.eup %2646 }
 0x553   : > { %v1691_v15 = vmul.f32 %v2647_v20, %v1658_v11  ;;  %vm1696_vm1 = vweird.f32 %v2647_v20  ;;  %v1918_v28 = vpop.xlane.xlu1 %1917 }
 0x554   : > { %vm1697_vm3 = vmor %vm1695_vm2, %vm1696_vm1  ;;  %2648 = vrcp.f32 %v1918_v28  ;;  %v1972_v33 = vand.u32 2147483648, %v1918_v28  ;;  %vm1966_vm13 = vweird.f32 %v1918_v28  ;;  %v1970_v5 = vand.u32 2147483647, %v1918_v28 }
 0x555   : > { %v1692_v56 = vsub.f32 1.0, %v1691_v15 }
 0x556   : > { %v1973_v32 = vor.u32 1.1754944e-38, %v1972_v33 }
 0x557   : > { %v1693_v17 = vmul.f32 %v2647_v20, %v1692_v56 }
 0x559   : > { %v1694_v39 = vadd.f32 %v2647_v20, %v1693_v17 }
 0x55a   : > { %v2649_v42 = vpop.eup %2648 }
 0x55b   : > { %v1698_v49 = vsel %vm1697_vm3, %v2647_v20, %v1694_v39  ;;  %v1962_v4 = vmul.f32 %v2649_v42, %v1918_v28  ;;  %vm1967_vm4 = vweird.f32 %v2649_v42  ;;  %vm1971_vm3 = vcmp.eq.f32.partialorder %v1970_v5, 8.507059e+37  ;;  %v3432_v20 = vld [vmem:[%s3509_s11] ss:$0 sm:$0xff] }
 0x55c   : > { %v1703_v34 = vsel %vm1700_vm7, %v1702_v2, %v1698_v49  ;;  %vm1968_vm15 = vmor %vm1966_vm13, %vm1967_vm4  ;;  %vm2101_vm7 = vcmask 48128  }
 0x55d   : > { %v1720_v55 = vmul.f32 %v3390_v40, %v1703_v34  ;;  %v1963_v57 = vsub.f32 1.0, %v1962_v4 }
 0x55f   : > { %2409 = vmatmul.msk.f32.gmra.mxu3 %vm1127_vm6, %v1720_v55  ;;  %v1964_v18 = vmul.f32 %v2649_v42, %v1963_v57 }
 0x561   : > { %v1965_v30 = vadd.f32 %v2649_v42, %v1964_v18 }
 0x563   : > { %v1969_v12 = vsel %vm1968_vm15, %v2649_v42, %v1965_v30 }
 0x564   : > { %v1974_v52 = vsel %vm1971_vm3, %v1973_v32, %v1969_v12 }
 0x569   : > { %v1915_v3 = vpop.xlane.xlu2 %1914 }
 0x56a   : > { %2650 = vrcp.f32 %v1915_v3  ;;  %v1958_v8 = vand.u32 2147483648, %v1915_v3  ;;  %v1956_v40 = vand.u32 2147483647, %v1915_v3  ;;  %vm1952_vm9 = vweird.f32 %v1915_v3 }
 0x56b   : > { %v2049_v59 = vpop.permute.xlu1 %2048 }
 0x56c   : > { %v1959_v25 = vor.u32 1.1754944e-38, %v1958_v8  ;;  %vm1957_vm11 = vcmp.eq.f32.partialorder %v1956_v40, 8.507059e+37  ;;  %v2092_v15 = vsel %vm1037_vm5, %v3335_v36, %v2049_v59 }
 0x56e   : > { %v1661_v63 = vpop.xlane.xlu0 %1660 }
 0x56f   : > { %2652 = vrcp.f32 %v1661_v63  ;;  %v1715_v29 = vand.u32 2147483648, %v1661_v63  ;;  %v1713_v27 = vand.u32 2147483647, %v1661_v63  ;;  %vm1709_vm14 = vweird.f32 %v1661_v63 }
 0x570   : > { %v2651_v7 = vpop.eup %2650 }
 0x571   : > { %v1948_v9 = vmul.f32 %v2651_v7, %v1915_v3  ;;  %vm1953_vm8 = vweird.f32 %v2651_v7  ;;  %v1716_v62 = vor.u32 1.1754944e-38, %v1715_v29  ;;  %vm1714_vm2 = vcmp.eq.f32.partialorder %v1713_v27, 8.507059e+37 }
 0x572   : > { %vm1954_vm10 = vmor %vm1952_vm9, %vm1953_vm8 }
 0x573   : > { %v1949_v45 = vsub.f32 1.0, %v1948_v9  ;;  %v2053_v36 = vpop.permute.xlu1 %2052 }
 0x574   : > { %v2094_v3 = vsel %vm1037_vm5, %v3339_v6, %v2053_v36 }
 0x575   : > { %v2653_v14 = vpop.eup %2652  ;;  %v1950_v24 = vmul.f32 %v2651_v7, %v1949_v45 }
 0x576   : > { %v1705_v19 = vmul.f32 %v2653_v14, %v1661_v63  ;;  %vm1710_vm12 = vweird.f32 %v2653_v14 }
 0x577   : > { %v1951_v21 = vadd.f32 %v2651_v7, %v1950_v24  ;;  %vm1711_vm1 = vmor %vm1709_vm14, %vm1710_vm12 }
 0x578   : > { %v1706_v61 = vsub.f32 1.0, %v1705_v19 }
 0x579   : > { %v1955_v26 = vsel %vm1954_vm10, %v2651_v7, %v1951_v21 }
 0x57a   : > { %v1707_v31 = vmul.f32 %v2653_v14, %v1706_v61  ;;  %v1960_v35 = vsel %vm1957_vm11, %v1959_v25, %v1955_v26  ;;  %v2670_v26 = vld [vmem:[%s2839_s16] sm:$0xff] }
 0x57b   : > { %v1977_v50 = vmul.f32 %v3399_v54, %v1960_v35  ;;  %v1978_v54 = vmul.f32 %v3394_v10, %v1974_v52  ;;  %v3427_v10 = vpop.permute.xlu2 %2050 }
 0x57c   : > { %v1708_v13 = vadd.f32 %v2653_v14, %v1707_v31 }
 0x57d   : > { %2423 = vmatmul.msk.f32.gmra.mxu2 %vm1127_vm6, %v1977_v50 }
 0x57e   : > { %v1712_v0 = vsel %vm1711_vm1, %v2653_v14, %v1708_v13 }
 0x57f   : > { %v1717_v46 = vsel %vm1714_vm2, %v1716_v62, %v1712_v0 }
 0x580   : > { %v1721_v51 = vmul.f32 %v3403_v44, %v1717_v46 }
 0x582   : > { %2410 = vmatmul.msk.f32.gmra.mxu3 %vm1127_vm6, %v1721_v51 }
 0x583   : > { %v2055_v23 = vpop.permute.xlu2 %2054 }
 0x584   : > { %v2095_v0 = vsel %vm1037_vm5, %v3341_v38, %v2055_v23  ;;  %v2093_v38 = vsel %vm1037_vm5, %v3337_v37, %v3427_v10  ;;  %v2671_v23 = vld [vmem:[%s2839_s16 + $0x10] sm:$0xff] }
 0x585   : > { %2424 = vmatmul.msk.f32.gmra.mxu2 %vm1127_vm6, %v1978_v54  ;;  %vm2096_vm6 = vcmask 31744  }
 0x5b9   : > { %v1775_v43 = vpop.f32.mrf.mxu3 }
 0x5ba   : > { %2064 = vrot.lane.b32.xlu0 %v1775_v43, %s2719_s18 }
 0x5c1   : > { %v1778_v53 = vpop.f32.mrf.mxu3 }
 0x5c2   : > { %2066 = vrot.lane.b32.xlu1 %v1778_v53, %s2719_s18 }
 0x5cc   : > { %v2032_v60 = vpop.f32.mrf.mxu2 }
 0x5d4   : > { %v2035_v47 = vpop.f32.mrf.mxu2 }
 0x5e2   : > { %v1781_v16 = vpop.f32.mrf.mxu3 }
 0x5e3   : > { %2068 = vrot.lane.b32.xlu2 %v1781_v16, %s2719_s18 }
 0x5eb   : > { %2080 = vrot.lane.b32.xlu2 %v2032_v60, %s2720_s19 }
 0x600   : > { %v2038_v48 = vpop.f32.mrf.mxu2 }
 0x601   : > { %2084 = vrot.lane.b32.xlu2 %v2038_v48, %s2720_s19 }
 0x605   : > { %v1784_v44 = vpop.f32.mrf.mxu3 }
 0x606   : > { %2070 = vrot.lane.b32.xlu1 %v1784_v44, %s2719_s18 }
 0x608   : > { %v2041_v58 = vpop.f32.mrf.mxu2 }
 0x609   : > { %2086 = vrot.lane.b32.xlu0 %v2041_v58, %s2720_s19 }
 0x60e   : > { %2082 = vrot.lane.b32.xlu1 %v2035_v47, %s2720_s19 }
 0x62c   : > { %v2065_v41 = vpop.permute.xlu0 %2064 }
 0x62d   : > { %v2097_v56 = vsel %vm2096_vm6, %v2092_v15, %v2065_v41 }
 0x634   : > { %v2067_v35 = vpop.permute.xlu1 %2066 }
 0x635   : > { %v2098_v44 = vsel %vm2096_vm6, %v2093_v38, %v2067_v35 }
 0x63d   : > { %v2069_v11 = vpop.permute.xlu2 %2068 }
 0x63e   : > { %v2099_v42 = vsel %vm2096_vm6, %v2094_v3, %v2069_v11 }
 0x645   : > { %v2081_v17 = vpop.permute.xlu2 %2080 }
 0x646   : > { %v2102_v1 = vsel %vm2101_vm7, %v2097_v56, %v2081_v17 }
 0x647   : > { %v2110_v39 = vmul.f32 %v3432_v20, %v2102_v1 }
 0x649   : > { %v2118_v2 = vadd.f32 %v3440_v22, %v2110_v39 }
 0x64b   : > { %v2122_v49 = vsub.f32 0.0, %v2118_v2 }
 0x64d   : > { %v2126_v34 = vmul.f32 1.442695, %v2122_v49 }
 0x64f   : > { %2654 = vpow2.f32 %v2126_v34 }
 0x655   : > { %v2655_v55 = vpop.eup %2654 }
 0x656   : > { %v2134_v28 = vadd.f32 1.0, %v2655_v55 }
 0x658   : > { %2656 = vrcp.f32 %v2134_v28  ;;  %v2149_v18 = vand.u32 2147483648, %v2134_v28  ;;  %v2147_v40 = vand.u32 2147483647, %v2134_v28  ;;  %vm2143_vm9 = vweird.f32 %v2134_v28 }
 0x65a   : > { %v2150_v21 = vor.u32 1.1754944e-38, %v2149_v18  ;;  %vm2148_vm4 = vcmp.eq.f32.partialorder %v2147_v40, 8.507059e+37  ;;  %v2672_v40 = vld [vmem:[%s2839_s16 + $0x18] sm:$0xff] }
 0x65b   : > { %v2085_v4 = vpop.permute.xlu2 %2084 }
 0x65c   : > { %v2104_v63 = vsel %vm2101_vm7, %v2099_v42, %v2085_v4 }
 0x65d   : > { %v2112_v7 = vmul.f32 %v3432_v20, %v2104_v63 }
 0x65e   : > { %v2657_v57 = vpop.eup %2656 }
 0x65f   : > { %v2139_v9 = vmul.f32 %v2657_v57, %v2134_v28  ;;  %v2120_v45 = vadd.f32 %v3440_v22, %v2112_v7  ;;  %vm2144_vm8 = vweird.f32 %v2657_v57 }
 0x660   : > { %vm2145_vm10 = vmor %vm2143_vm9, %vm2144_vm8 }
 0x661   : > { %v2140_v8 = vsub.f32 1.0, %v2139_v9  ;;  %v2124_v14 = vsub.f32 0.0, %v2120_v45 }
 0x663   : > { %v2141_v24 = vmul.f32 %v2657_v57, %v2140_v8  ;;  %v2130_v6 = vmul.f32 1.442695, %v2124_v14 }
 0x665   : > { %v2142_v19 = vadd.f32 %v2657_v57, %v2141_v24  ;;  %2658 = vpow2.f32 %v2130_v6 }
 0x667   : > { %v2146_v33 = vsel %vm2145_vm10, %v2657_v57, %v2142_v19 }
 0x668   : > { %v2151_v25 = vsel %vm2148_vm4, %v2150_v21, %v2146_v33 }
 0x669   : > { %v2194_v61 = vmul.f32 %v2151_v25, %v2118_v2 }
 0x66b   : > { %v2659_v29 = vpop.eup %2658  ;;  %v2198_v30 = vadd.f32 %v2670_v26, %v2194_v61  ;;  %v2673_v61 = vld [vmem:[%s2839_s16 + $0x8] sm:$0xff] }
 0x66c   : > { %v2136_v31 = vadd.f32 1.0, %v2659_v29 }
 0x66d   : > { %2202 = vst.msk [vmem:[%s3456_s26] sm:$0xff] %vm539_vm0, %v2198_v30 }
 0x66e   : > { %2660 = vrcp.f32 %v2136_v31  ;;  %v2177_v13 = vand.u32 2147483648, %v2136_v31  ;;  %v2175_v32 = vand.u32 2147483647, %v2136_v31  ;;  %vm2171_vm12 = vweird.f32 %v2136_v31 }
 0x670   : > { %v2178_v54 = vor.u32 1.1754944e-38, %v2177_v13  ;;  %vm2176_vm14 = vcmp.eq.f32.partialorder %v2175_v32, 8.507059e+37 }
 0x674   : > { %v2661_v27 = vpop.eup %2660 }
 0x675   : > { %v2167_v50 = vmul.f32 %v2661_v27, %v2136_v31  ;;  %vm2172_vm11 = vweird.f32 %v2661_v27 }
 0x676   : > { %vm2173_vm13 = vmor %vm2171_vm12, %vm2172_vm11 }
 0x677   : > { %v2168_v5 = vsub.f32 1.0, %v2167_v50 }
 0x678   : > { %v2071_v62 = vpop.permute.xlu1 %2070 }
 0x679   : > { %v2169_v12 = vmul.f32 %v2661_v27, %v2168_v5  ;;  %v2100_v51 = vsel %vm2096_vm6, %v2095_v0, %v2071_v62 }
 0x67b   : > { %v2170_v46 = vadd.f32 %v2661_v27, %v2169_v12  ;;  %v2087_v52 = vpop.permute.xlu0 %2086 }
 0x67c   : > { %v2105_v43 = vsel %vm2101_vm7, %v2100_v51, %v2087_v52 }
 0x67d   : > { %v2174_v53 = vsel %vm2173_vm13, %v2661_v27, %v2170_v46  ;;  %v2113_v16 = vmul.f32 %v3432_v20, %v2105_v43 }
 0x67e   : > { %v2179_v60 = vsel %vm2176_vm14, %v2178_v54, %v2174_v53 }
 0x67f   : > { %v2196_v47 = vmul.f32 %v2179_v60, %v2120_v45  ;;  %v2121_v48 = vadd.f32 %v3440_v22, %v2113_v16 }
 0x680   : > { %v2083_v58 = vpop.permute.xlu1 %2082 }
 0x681   : > { %v2200_v11 = vadd.f32 %v2671_v23, %v2196_v47  ;;  %v2125_v59 = vsub.f32 0.0, %v2121_v48  ;;  %v2103_v41 = vsel %vm2101_vm7, %v2098_v44, %v2083_v58 }
 0x682   : > { %v2111_v15 = vmul.f32 %v3432_v20, %v2103_v41 }
 0x683   : > { %2204 = vst.msk [vmem:[%s3456_s26 + $0x10] sm:$0xff] %vm539_vm0, %v2200_v11  ;;  %v2132_v56 = vmul.f32 1.442695, %v2125_v59 }
 0x684   : > { %v2119_v17 = vadd.f32 %v3440_v22, %v2111_v15 }
 0x685   : > { %2662 = vpow2.f32 %v2132_v56 }
 0x686   : > { %v2123_v37 = vsub.f32 0.0, %v2119_v17 }
 0x688   : > { %v2128_v10 = vmul.f32 1.442695, %v2123_v37 }
 0x68a   : > { %2664 = vpow2.f32 %v2128_v10 }
 0x68b   : > { %v2663_v1 = vpop.eup %2662 }
 0x68c   : > { %v2137_v39 = vadd.f32 1.0, %v2663_v1 }
 0x68e   : > { %2666 = vrcp.f32 %v2137_v39  ;;  %v2191_v36 = vand.u32 2147483648, %v2137_v39  ;;  %v2189_v42 = vand.u32 2147483647, %v2137_v39  ;;  %vm2185_vm15 = vweird.f32 %v2137_v39 }
 0x690   : > { %v2665_v2 = vpop.eup %2664  ;;  %v2192_v63 = vor.u32 1.1754944e-38, %v2191_v36  ;;  %vm2190_vm2 = vcmp.eq.f32.partialorder %v2189_v42, 8.507059e+37 }
 0x691   : > { %v2135_v49 = vadd.f32 1.0, %v2665_v2 }
 0x693   : > { %2668 = vrcp.f32 %v2135_v49  ;;  %v2163_v9 = vand.u32 2147483648, %v2135_v49  ;;  %v2161_v14 = vand.u32 2147483647, %v2135_v49  ;;  %vm2157_vm6 = vweird.f32 %v2135_v49 }
 0x694   : > { %v2667_v34 = vpop.eup %2666 }
 0x695   : > { %v2181_v55 = vmul.f32 %v2667_v34, %v2137_v39  ;;  %vm2186_vm5 = vweird.f32 %v2667_v34  ;;  %v2164_v19 = vor.u32 1.1754944e-38, %v2163_v9  ;;  %vm2162_vm8 = vcmp.eq.f32.partialorder %v2161_v14, 8.507059e+37 }
 0x696   : > { %vm2187_vm1 = vmor %vm2185_vm15, %vm2186_vm5 }
 0x697   : > { %v2182_v28 = vsub.f32 1.0, %v2181_v55 }
 0x699   : > { %v2669_v20 = vpop.eup %2668  ;;  %v2183_v3 = vmul.f32 %v2667_v34, %v2182_v28 }
 0x69a   : > { %v2153_v4 = vmul.f32 %v2669_v20, %v2135_v49  ;;  %vm2158_vm3 = vweird.f32 %v2669_v20 }
 0x69b   : > { %v2184_v22 = vadd.f32 %v2667_v34, %v2183_v3  ;;  %vm2159_vm7 = vmor %vm2157_vm6, %vm2158_vm3 }
 0x69c   : > { %v2154_v7 = vsub.f32 1.0, %v2153_v4 }
 0x69d   : > { %v2188_v57 = vsel %vm2187_vm1, %v2667_v34, %v2184_v22 }
 0x69e   : > { %v2193_v45 = vsel %vm2190_vm2, %v2192_v63, %v2188_v57  ;;  %v2155_v8 = vmul.f32 %v2669_v20, %v2154_v7 }
 0x69f   : > { %v2197_v18 = vmul.f32 %v2193_v45, %v2121_v48 }
 0x6a0   : > { %v2156_v24 = vadd.f32 %v2669_v20, %v2155_v8 }
 0x6a1   : > { %v2201_v6 = vadd.f32 %v2672_v40, %v2197_v18 }
 0x6a2   : > { %v2160_v21 = vsel %vm2159_vm7, %v2669_v20, %v2156_v24 }
 0x6a3   : > { %2205 = vst.msk [vmem:[%s3456_s26 + $0x18] sm:$0xff] %vm539_vm0, %v2201_v6  ;;  %v2165_v33 = vsel %vm2162_vm8, %v2164_v19, %v2160_v21 }
 0x6a4   : > { %v2195_v25 = vmul.f32 %v2165_v33, %v2119_v17 }
 0x6a6   : > { %v2199_v29 = vadd.f32 %v2673_v61, %v2195_v25 }
 0x6a8   : > { %2203 = vst.msk [vmem:[%s3456_s26 + $0x8] sm:$0xff] %vm539_vm0, %v2199_v29 }
 0x6a9 PF: > { %s23_s29 = sadd.s32 1, %s2712_s29   ;;  %s3522_s25 = smov %s2704_s27 }
 0x6aa   : > { %p20_p7 = scmp.ge.s32.totalorder %s23_s29, 6   ;;  %s3523_s26 = smov %s2708_s28 }
 0x6ab   : > { %s3524_s27 = smov %s3527_s30  ;;  %s3525_s28 = smov %s3531_s14 }
 0x6ac   :  { %22 = sbr.rel (!%p20_p7) target bundleno = 3 (0x3), region = 108 }

</bundles_post_ra>
